<compile_context>
chip_gen: v7x
topology: tpu7x:2x2x1
jax: 0.10.0
libtpu: 0.0.40
codegen_flags: <defaults>
</compile_context>

<pallas_src>
import numpy as np
import jax
import jax.numpy as jnp
from jax.experimental import pallas as pl
from jax.experimental.pallas import tpu as pltpu

# Set to jnp.bfloat16 on v5e/v6e/v7x at production sizes (f32 accumulation is
# kept via preferred_element_type).  Kept f32 here so the self-check is tight.
MATMUL_DTYPE = jnp.float32


# ------------------------------ JAX wrapper ----------------------------------

def llama_block_pallas(x, params, rope_consts):
    B, M, D = x.shape
    H = params["wqT"].shape[0]
    HD = H * D
    D2 = 2 * D            # SwiGLU fused gate|linear width
    W2 = 2 * HD           # fused q|k RoPE block width
    W3 = 3 * HD
    f32 = jnp.float32
    inv_sqrt_d = 1.0 / float(np.sqrt(D))
    inv_numel = 1.0 / float(M * D)

    # ---- host-side weight prep (one-time, negligible vs. the kernel) ----
    # fused QKV projection, with 1/sqrt(D) folded into the Q columns
    wq = jnp.moveaxis(params["wqT"], 0, 1).reshape(D, HD) * inv_sqrt_d
    wk = jnp.moveaxis(params["wkT"], 0, 1).reshape(D, HD)
    wv = jnp.moveaxis(params["wvT"], 0, 1).reshape(D, HD)
    wqkv = jnp.concatenate([wq, wk, wv], axis=1).astype(MATMUL_DTYPE)   # (D, 3HD)

    wo = params["woT"].astype(MATMUL_DTYPE)                             # (HD, D)
    w1 = params["w1T"].astype(MATMUL_DTYPE)                             # (D, D)
    wgl = jnp.concatenate([params["wgT"], params["wlT"]], axis=1).astype(
        MATMUL_DTYPE)                                                   # (D, 2D)
    bgl = jnp.concatenate([params["bg"], params["bl"]], axis=1)         # (1, 2D)

    # RoPE tables: tiled over the 2H q|k head blocks only (NOT over batch).
    cos = rope_consts["cos"][:M]                       # (M, D)
    sin = rope_consts["sin"][:M]                       # (M, D)
    par = (jnp.arange(D) % 2).astype(f32)              # 1 on odd lanes
    cos_qk = jnp.tile(cos, (1, 2 * H))                 # (M, 2HD)
    sine_qk = jnp.tile(sin * (1.0 - par), (1, 2 * H))  # sin on even lanes only
    sino_qk = jnp.tile(sin * par, (1, 2 * H))          # sin on odd lanes only
    scale = params["scale"][:M].astype(f32)            # (M, D), shared across batch

    # ---------------------------- Pallas kernel ------------------------------
    def kernel(x_ref, scale_ref, wqkv_ref, cos_ref, sine_ref, sino_ref,
               wo_ref, bo_ref, w1_ref, b1_ref, wgl_ref, bgl_ref, beta_ref,
               o_ref):
        xb = x_ref[...]                                   # (M, D): one batch element
        scl = scale_ref[...]

        def rmsnorm(v):
            # single whole-block reduction (per-batch-element Frobenius norm)
            ss = jnp.sum(jnp.sum(v * v, axis=-1, keepdims=True),
                         axis=0, keepdims=True)           # (1, 1)
            return scl * (v * jax.lax.rsqrt(ss * inv_numel))

        xn = rmsnorm(xb)

        # fused Q/K/V projection for all heads (1/sqrt(D) pre-folded into Wq)
        proj = jnp.dot(xn.astype(MATMUL_DTYPE), wqkv_ref[...],
                       preferred_element_type=f32)        # (M, 3HD)

        # RoPE on the lane-dense fused q|k block: even/odd pair swap via XLU
        # rolls; even/odd selection is pre-baked into the sin tables.
        qk = proj[:, :W2]                                 # (M, 2HD)
        qk_rot = (qk * cos_ref[...]
                  + pltpu.roll(qk, W2 - 1, axis=1) * sine_ref[...]  # lane j <- j+1
                  + pltpu.roll(qk, 1, axis=1) * sino_ref[...])      # lane j <- j-1
        qk_rot = qk_rot.astype(MATMUL_DTYPE)              # cast once (hoisted)
        v_all = proj[:, W2:].astype(MATMUL_DTYPE)         # (M, HD), cast once

        # per-batch causal mask (M, M) -- no cross-batch block-diagonal waste
        r = jax.lax.broadcasted_iota(jnp.int32, (M, M), 0)
        c = jax.lax.broadcasted_iota(jnp.int32, (M, M), 1)
        causal = r >= c

        # q.k^T via dot_general on last dims (no materialized transpose).
        dn_qk = (((1,), (1,)), ((), ()))
        head_outs = []
        for h in range(H):                                # static; slices are 128-aligned
            qh = qk_rot[:, h * D:(h + 1) * D]
            kh = qk_rot[:, HD + h * D:HD + (h + 1) * D]
            vh = v_all[:, h * D:(h + 1) * D]
            s = jax.lax.dot_general(qh, kh, dn_qk, preferred_element_type=f32)
            s = jnp.where(causal, s, jnp.float32(-1e30))
            s = s - jnp.max(s, axis=-1, keepdims=True)
            p = jnp.exp(s)
            p = p / jnp.sum(p, axis=-1, keepdims=True)    # exact reciprocal
            head_outs.append(jnp.dot(p.astype(MATMUL_DTYPE), vh,
                                     preferred_element_type=f32))
        cat = jnp.concatenate(head_outs, axis=-1).astype(MATMUL_DTYPE)  # (M, HD)

        attn = jnp.dot(cat, wo_ref[...], preferred_element_type=f32) + bo_ref[...]
        # TODO(synk): attention dropout_p=0.1 / nn.Dropout(0.1) treated as identity.
        x1 = xn + attn                                    # residual onto normalized xn

        # second RMSNorm + feed-forward (Linear -> SwiGLU, gate/lin fused)
        x2 = rmsnorm(x1)
        h0 = jnp.dot(x2.astype(MATMUL_DTYPE), w1_ref[...],
                     preferred_element_type=f32) + b1_ref[...]
        gl = jnp.dot(h0.astype(MATMUL_DTYPE), wgl_ref[...],
                     preferred_element_type=f32) + bgl_ref[...]        # (M, 2D)
        gate = gl[:, :D]                                  # 128-aligned split
        lin = gl[:, D:]
        beta = beta_ref[0, 0]                             # SMEM scalar
        swish = gate * jax.nn.sigmoid(beta * gate)
        # Module does `x = rms(x); x = x + feedforward(x)` -> residual uses x2.
        o_ref[...] = (x2 + swish * lin).astype(o_ref.dtype)

    # ------------------------------- specs -----------------------------------
    def const(shape):
        nd = len(shape)
        return pl.BlockSpec(shape, lambda b, _nd=nd: (0,) * _nd)

    in_specs = [
        pl.BlockSpec((None, M, D), lambda b: (b, 0, 0)),    # x: one batch element / step
        const((M, D)),                                      # RMSNorm scale (shared)
        const((D, W3)),                                     # fused Wqkv
        const((M, W2)), const((M, W2)), const((M, W2)),     # cos, sin_even, sin_odd
        const((HD, D)), const((1, D)),                      # Wo^T, bo
        const((D, D)), const((1, D)),                       # W1^T, b1
        const((D, D2)), const((1, D2)),                     # [Wg|Wl]^T, [bg|bl]
        pl.BlockSpec(memory_space=pltpu.MemorySpace.SMEM),  # beta (scalar)
    ]
    out_spec = pl.BlockSpec((None, M, D), lambda b: (b, 0, 0))

    out = pl.pallas_call(
        kernel,
        out_shape=jax.ShapeDtypeStruct((B, M, D), f32),
        grid=(B,),
        in_specs=in_specs,
        out_specs=out_spec,
        compiler_params=pltpu.CompilerParams(
            dimension_semantics=("parallel",)),             # megacore-shardable
    )(x.astype(f32), scale, wqkv, cos_qk, sine_qk, sino_qk,
      wo, params["bo"], w1, params["b1"], wgl, bgl, params["beta"])
    return out


# -------------------------- parameters / constants ---------------------------

def get_rotary_matrix(context_window, embedding_dim):
    R = np.zeros((context_window, embedding_dim, embedding_dim), dtype=np.float32)
    for position in range(context_window):
        for i in range(embedding_dim // 2):
            theta = 10000.0 ** (-2.0 * (i - 1) / embedding_dim)
            m_theta = position * theta
            R[position, 2 * i, 2 * i] = np.cos(m_theta)
            R[position, 2 * i, 2 * i + 1] = -np.sin(m_theta)
            R[position, 2 * i + 1, 2 * i] = np.sin(m_theta)
            R[position, 2 * i + 1, 2 * i + 1] = np.cos(m_theta)
    return R


def rope_constants(R):
    # cos[p,e] = R[p,e,e]; sin[p,2i] = R[p,2i+1,2i]; sin[p,2i+1] = R[p,2i,2i+1]
    # so q_rot = q*cos + pair_swap(q)*sin  (signs already baked into sin).
    CW, D, _ = R.shape
    cos = np.einsum("pee->pe", R).astype(np.float32)
    sin = np.zeros((CW, D), dtype=np.float32)
    sin[:, 0::2] = R[:, 1::2, 0::2].diagonal(axis1=1, axis2=2)
    sin[:, 1::2] = R[:, 0::2, 1::2].diagonal(axis1=1, axis2=2)
    return {"cos": jnp.asarray(cos), "sin": jnp.asarray(sin)}


def init_params(key, cw, d, h):
    ks = jax.random.split(key, 12)
    init = lambda k, shape: 0.05 * jax.random.normal(k, shape, jnp.float32)
    return dict(
        # scale is ones in torch init; perturb slightly to exercise the path
        scale=1.0 + 0.1 * jax.random.normal(ks[11], (cw, d), jnp.float32),
        wqT=init(ks[0], (h, d, d)),                  # per-head W_q^T
        wkT=init(ks[1], (h, d, d)),
        wvT=init(ks[2], (h, d, d)),
        woT=init(ks[3], (h * d, d)),                 # output projection W^T
        bo=init(ks[4], (1, d)),
        w1T=init(ks[5], (d, d)),                     # feedforward first Linear
        b1=init(ks[6], (1, d)),
        wgT=init(ks[7], (d, d)),                     # SwiGLU gate Linear
        bg=init(ks[8], (1, d)),
        wlT=init(ks[9], (d, d)),                     # SwiGLU linear
        bl=init(ks[10], (1, d)),
        beta=jnp.ones((1, 1), jnp.float32),
    )


# ------------------------- pure-JAX reference (check) ------------------------

def llama_block_ref(x, params, R):
    HIGH = jax.lax.Precision.HIGHEST
    B, M, D = x.shape
    scale = params["scale"][:M]

    def rms(v):
        ff = jnp.sqrt(jnp.sum(v * v, axis=(1, 2))) * (M * D) ** -0.5
        return scale[None] * (v / ff[:, None, None])

    xn = rms(x)
    Rm = jnp.asarray(R[:M])
    H = params["wqT"].shape[0]
    mask = jnp.tril(jnp.ones((M, M), bool))
    heads = []
    for h in range(H):
        q = jnp.matmul(xn, params["wqT"][h], precision=HIGH)
        k = jnp.matmul(xn, params["wkT"][h], precision=HIGH)
        v = jnp.matmul(xn, params["wvT"][h], precision=HIGH)
        qr = jnp.einsum("bmd,mde->bme", q, Rm, precision=HIGH)
        kr = jnp.einsum("bmd,mde->bme", k, Rm, precision=HIGH)
        s = jnp.einsum("bme,bne->bmn", qr, kr, precision=HIGH) / jnp.sqrt(
            jnp.float32(D))
        s = jnp.where(mask[None], s, -jnp.inf)
        p = jax.nn.softmax(s, axis=-1)
        heads.append(jnp.einsum("bmn,bnd->bmd", p, v, precision=HIGH))
    cat = jnp.concatenate(heads, axis=-1)
    attn = jnp.matmul(cat, params["woT"], precision=HIGH) + params["bo"]
    x1 = xn + attn                          # residual from the normalized value
    x2 = rms(x1)
    h0 = jnp.matmul(x2, params["w1T"], precision=HIGH) + params["b1"]
    gate = jnp.matmul(h0, params["wgT"], precision=HIGH) + params["bg"]
    swish = gate * jax.nn.sigmoid(params["beta"][0, 0] * gate)
    ff = swish * (jnp.matmul(h0, params["wlT"], precision=HIGH) + params["bl"])
    return x2 + ff                          # second residual also uses rms(x1)


# ----------------------------------- main ------------------------------------

if __name__ == "__main__":
    # batch, seq, d_model, n_heads, context_window (d_model=128 -> lane-aligned)
    B, M, D, H, CW = 2, 8, 128, 2, 16

    key = jax.random.PRNGKey(0)
    kx, kp = jax.random.split(key)
    x = jax.random.normal(kx, (B, M, D), jnp.float32)

    params = init_params(kp, CW, D, H)
    R = get_rotary_matrix(CW, D)
    rope_c = rope_constants(R)

    out = jax.block_until_ready(llama_block_pallas(x, params, rope_c))
    ref = jax.block_until_ready(llama_block_ref(x, params, R))
    np.testing.assert_allclose(np.asarray(out), np.asarray(ref), rtol=2e-3, atol=2e-3)

    print("KERNEL_OK")
</pallas_src>

<mosaic_0001>
module attributes {stable_mosaic.version = 11 : i64} {
  func.func @kernel(%arg0: i32, %arg1: memref<1x8x128xf32, #tpu.memory_space<vmem>>, %arg2: memref<8x128xf32, #tpu.memory_space<vmem>>, %arg3: memref<128x768xf32, #tpu.memory_space<vmem>>, %arg4: memref<8x512xf32, #tpu.memory_space<vmem>>, %arg5: memref<8x512xf32, #tpu.memory_space<vmem>>, %arg6: memref<8x512xf32, #tpu.memory_space<vmem>>, %arg7: memref<256x128xf32, #tpu.memory_space<vmem>>, %arg8: memref<1x128xf32, #tpu.memory_space<vmem>>, %arg9: memref<128x128xf32, #tpu.memory_space<vmem>>, %arg10: memref<1x128xf32, #tpu.memory_space<vmem>>, %arg11: memref<128x256xf32, #tpu.memory_space<vmem>>, %arg12: memref<1x256xf32, #tpu.memory_space<vmem>>, %arg13: memref<1x1xf32, #tpu.memory_space<smem>>, %arg14: memref<1x8x128xf32, #tpu.memory_space<vmem>>) attributes {dimension_semantics = [#tpu.dimension_semantics<parallel>], iteration_bounds = array<i64: 2>, scalar_prefetch = 0 : i64, scratch_operands = 0 : i64, tpu.core_type = #tpu.core_type<tc>, window_params = [{transform_indices = @transform_0, window_bounds = array<i64: 1, 8, 128>}, {pipeline_mode = #tpu.pipeline_mode<synchronous>, transform_indices = @transform_1, window_bounds = array<i64: 8, 128>}, {pipeline_mode = #tpu.pipeline_mode<synchronous>, transform_indices = @transform_2, window_bounds = array<i64: 128, 768>}, {pipeline_mode = #tpu.pipeline_mode<synchronous>, transform_indices = @transform_3, window_bounds = array<i64: 8, 512>}, {pipeline_mode = #tpu.pipeline_mode<synchronous>, transform_indices = @transform_4, window_bounds = array<i64: 8, 512>}, {pipeline_mode = #tpu.pipeline_mode<synchronous>, transform_indices = @transform_5, window_bounds = array<i64: 8, 512>}, {pipeline_mode = #tpu.pipeline_mode<synchronous>, transform_indices = @transform_6, window_bounds = array<i64: 256, 128>}, {pipeline_mode = #tpu.pipeline_mode<synchronous>, transform_indices = @transform_7, window_bounds = array<i64: 1, 128>}, {pipeline_mode = #tpu.pipeline_mode<synchronous>, transform_indices = @transform_8, window_bounds = array<i64: 128, 128>}, {pipeline_mode = #tpu.pipeline_mode<synchronous>, transform_indices = @transform_9, window_bounds = array<i64: 1, 128>}, {pipeline_mode = #tpu.pipeline_mode<synchronous>, transform_indices = @transform_10, window_bounds = array<i64: 128, 256>}, {pipeline_mode = #tpu.pipeline_mode<synchronous>, transform_indices = @transform_11, window_bounds = array<i64: 1, 256>}, {transform_indices = @transform_12, window_bounds = array<i64: 1, 1>}, {transform_indices = @transform_13, window_bounds = array<i64: 1, 8, 128>}]} {
    %c0 = arith.constant 0 : index
    %c0_0 = arith.constant 0 : index
    %c0_1 = arith.constant 0 : index
    %0 = vector.load %arg1[%c0, %c0_0, %c0_1] : memref<1x8x128xf32, #tpu.memory_space<vmem>>, vector<1x8x128xf32>
    %1 = vector.shape_cast %0 : vector<1x8x128xf32> to vector<8x128xf32>
    %c0_2 = arith.constant 0 : index
    %c0_3 = arith.constant 0 : index
    %2 = vector.load %arg2[%c0_2, %c0_3] : memref<8x128xf32, #tpu.memory_space<vmem>>, vector<8x128xf32>
    %3 = arith.mulf %1, %1 : vector<8x128xf32>
    %cst = arith.constant dense<0.000000e+00> : vector<8xf32>
    %4 = vector.multi_reduction <add>, %3, %cst [1] : vector<8x128xf32> to vector<8xf32>
    %5 = vector.shape_cast %4 : vector<8xf32> to vector<8x1xf32>
    %cst_4 = arith.constant dense<0.000000e+00> : vector<1xf32>
    %6 = vector.multi_reduction <add>, %5, %cst_4 [0] : vector<8x1xf32> to vector<1xf32>
    %7 = vector.shape_cast %6 : vector<1xf32> to vector<1x1xf32>
    %cst_5 = arith.constant 9.765625E-4 : f32
    %8 = vector.broadcast %cst_5 : f32 to vector<1x1xf32>
    %9 = arith.mulf %7, %8 : vector<1x1xf32>
    %10 = math.rsqrt %9 : vector<1x1xf32>
    %11 = vector.broadcast %10 : vector<1x1xf32> to vector<8x128xf32>
    %12 = arith.mulf %1, %11 : vector<8x128xf32>
    %13 = arith.mulf %2, %12 : vector<8x128xf32>
    %c0_6 = arith.constant 0 : index
    %c0_7 = arith.constant 0 : index
    %14 = vector.load %arg3[%c0_6, %c0_7] : memref<128x768xf32, #tpu.memory_space<vmem>>, vector<128x768xf32>
    %cst_8 = arith.constant dense<0.000000e+00> : vector<8x768xf32>
    %15 = tpu.matmul %13, %14, %cst_8 {dimension_numbers = #tpu.dot_dimension_numbers<[1], [0], [0], [1], [0, 0, 1, 1], [], []>} : vector<8x128xf32>, vector<128x768xf32>, vector<8x768xf32> -> vector<8x768xf32>
    %16 = vector.extract_strided_slice %15 {offsets = [0, 0], sizes = [8, 512], strides = [1, 1]} : vector<8x768xf32> to vector<8x512xf32>
    %c0_9 = arith.constant 0 : index
    %c0_10 = arith.constant 0 : index
    %17 = vector.load %arg4[%c0_9, %c0_10] : memref<8x512xf32, #tpu.memory_space<vmem>>, vector<8x512xf32>
    %18 = arith.mulf %16, %17 : vector<8x512xf32>
    %c511_i32 = arith.constant 511 : i32
    %19 = tpu.dynamic_rotate %16 by %c511_i32 dim 1 : vector<8x512xf32>, i32 -> vector<8x512xf32>
    %c0_11 = arith.constant 0 : index
    %c0_12 = arith.constant 0 : index
    %20 = vector.load %arg5[%c0_11, %c0_12] : memref<8x512xf32, #tpu.memory_space<vmem>>, vector<8x512xf32>
    %21 = arith.mulf %19, %20 : vector<8x512xf32>
    %22 = arith.addf %18, %21 : vector<8x512xf32>
    %c1_i32 = arith.constant 1 : i32
    %23 = tpu.dynamic_rotate %16 by %c1_i32 dim 1 : vector<8x512xf32>, i32 -> vector<8x512xf32>
    %c0_13 = arith.constant 0 : index
    %c0_14 = arith.constant 0 : index
    %24 = vector.load %arg6[%c0_13, %c0_14] : memref<8x512xf32, #tpu.memory_space<vmem>>, vector<8x512xf32>
    %25 = arith.mulf %23, %24 : vector<8x512xf32>
    %26 = arith.addf %22, %25 : vector<8x512xf32>
    %27 = vector.extract_strided_slice %15 {offsets = [0, 512], sizes = [8, 256], strides = [1, 1]} : vector<8x768xf32> to vector<8x256xf32>
    %28 = tpu.iota {dimensions = array<i32: 0>} : vector<8x8xi32>
    %29 = tpu.iota {dimensions = array<i32: 1>} : vector<8x8xi32>
    %30 = arith.cmpi sge, %28, %29 : vector<8x8xi32>
    %31 = vector.extract_strided_slice %26 {offsets = [0, 0], sizes = [8, 128], strides = [1, 1]} : vector<8x512xf32> to vector<8x128xf32>
    %32 = vector.extract_strided_slice %26 {offsets = [0, 256], sizes = [8, 128], strides = [1, 1]} : vector<8x512xf32> to vector<8x128xf32>
    %33 = vector.extract_strided_slice %27 {offsets = [0, 0], sizes = [8, 128], strides = [1, 1]} : vector<8x256xf32> to vector<8x128xf32>
    %cst_15 = arith.constant dense<0.000000e+00> : vector<8x8xf32>
    %34 = tpu.matmul %31, %32, %cst_15 {dimension_numbers = #tpu.dot_dimension_numbers<[1], [1], [0], [0], [0, 0, 1, 0], [], []>} : vector<8x128xf32>, vector<8x128xf32>, vector<8x8xf32> -> vector<8x8xf32>
    %cst_16 = arith.constant -1.000000e+30 : f32
    %35 = vector.broadcast %cst_16 : f32 to vector<8x8xf32>
    %36 = arith.select %30, %34, %35 : vector<8x8xi1>, vector<8x8xf32>
    %cst_17 = arith.constant dense<0xFF800000> : vector<8xf32>
    %37 = vector.multi_reduction <maximumf>, %36, %cst_17 [1] : vector<8x8xf32> to vector<8xf32>
    %38 = vector.shape_cast %37 : vector<8xf32> to vector<8x1xf32>
    %39 = vector.broadcast %38 : vector<8x1xf32> to vector<8x8xf32>
    %40 = arith.subf %36, %39 : vector<8x8xf32>
    %41 = math.exp %40 : vector<8x8xf32>
    %cst_18 = arith.constant dense<0.000000e+00> : vector<8xf32>
    %42 = vector.multi_reduction <add>, %41, %cst_18 [1] : vector<8x8xf32> to vector<8xf32>
    %43 = vector.shape_cast %42 : vector<8xf32> to vector<8x1xf32>
    %44 = vector.broadcast %43 : vector<8x1xf32> to vector<8x8xf32>
    %45 = arith.divf %41, %44 : vector<8x8xf32>
    %cst_19 = arith.constant dense<0.000000e+00> : vector<8x128xf32>
    %46 = tpu.matmul %45, %33, %cst_19 {dimension_numbers = #tpu.dot_dimension_numbers<[1], [0], [0], [1], [0, 0, 1, 1], [], []>} : vector<8x8xf32>, vector<8x128xf32>, vector<8x128xf32> -> vector<8x128xf32>
    %47 = vector.extract_strided_slice %26 {offsets = [0, 128], sizes = [8, 128], strides = [1, 1]} : vector<8x512xf32> to vector<8x128xf32>
    %48 = vector.extract_strided_slice %26 {offsets = [0, 384], sizes = [8, 128], strides = [1, 1]} : vector<8x512xf32> to vector<8x128xf32>
    %49 = vector.extract_strided_slice %27 {offsets = [0, 128], sizes = [8, 128], strides = [1, 1]} : vector<8x256xf32> to vector<8x128xf32>
    %cst_20 = arith.constant dense<0.000000e+00> : vector<8x8xf32>
    %50 = tpu.matmul %47, %48, %cst_20 {dimension_numbers = #tpu.dot_dimension_numbers<[1], [1], [0], [0], [0, 0, 1, 0], [], []>} : vector<8x128xf32>, vector<8x128xf32>, vector<8x8xf32> -> vector<8x8xf32>
    %cst_21 = arith.constant -1.000000e+30 : f32
    %51 = vector.broadcast %cst_21 : f32 to vector<8x8xf32>
    %52 = arith.select %30, %50, %51 : vector<8x8xi1>, vector<8x8xf32>
    %cst_22 = arith.constant dense<0xFF800000> : vector<8xf32>
    %53 = vector.multi_reduction <maximumf>, %52, %cst_22 [1] : vector<8x8xf32> to vector<8xf32>
    %54 = vector.shape_cast %53 : vector<8xf32> to vector<8x1xf32>
    %55 = vector.broadcast %54 : vector<8x1xf32> to vector<8x8xf32>
    %56 = arith.subf %52, %55 : vector<8x8xf32>
    %57 = math.exp %56 : vector<8x8xf32>
    %cst_23 = arith.constant dense<0.000000e+00> : vector<8xf32>
    %58 = vector.multi_reduction <add>, %57, %cst_23 [1] : vector<8x8xf32> to vector<8xf32>
    %59 = vector.shape_cast %58 : vector<8xf32> to vector<8x1xf32>
    %60 = vector.broadcast %59 : vector<8x1xf32> to vector<8x8xf32>
    %61 = arith.divf %57, %60 : vector<8x8xf32>
    %cst_24 = arith.constant dense<0.000000e+00> : vector<8x128xf32>
    %62 = tpu.matmul %61, %49, %cst_24 {dimension_numbers = #tpu.dot_dimension_numbers<[1], [0], [0], [1], [0, 0, 1, 1], [], []>} : vector<8x8xf32>, vector<8x128xf32>, vector<8x128xf32> -> vector<8x128xf32>
    %63 = tpu.concatenate %46, %62 in 1 : vector<8x128xf32>, vector<8x128xf32> -> vector<8x256xf32>
    %c0_25 = arith.constant 0 : index
    %c0_26 = arith.constant 0 : index
    %64 = vector.load %arg7[%c0_25, %c0_26] : memref<256x128xf32, #tpu.memory_space<vmem>>, vector<256x128xf32>
    %cst_27 = arith.constant dense<0.000000e+00> : vector<8x128xf32>
    %65 = tpu.matmul %63, %64, %cst_27 {dimension_numbers = #tpu.dot_dimension_numbers<[1], [0], [0], [1], [0, 0, 1, 1], [], []>} : vector<8x256xf32>, vector<256x128xf32>, vector<8x128xf32> -> vector<8x128xf32>
    %c0_28 = arith.constant 0 : index
    %c0_29 = arith.constant 0 : index
    %66 = vector.load %arg8[%c0_28, %c0_29] : memref<1x128xf32, #tpu.memory_space<vmem>>, vector<1x128xf32>
    %67 = vector.broadcast %66 : vector<1x128xf32> to vector<8x128xf32>
    %68 = arith.addf %65, %67 : vector<8x128xf32>
    %69 = arith.addf %13, %68 : vector<8x128xf32>
    %70 = arith.mulf %69, %69 : vector<8x128xf32>
    %cst_30 = arith.constant dense<0.000000e+00> : vector<8xf32>
    %71 = vector.multi_reduction <add>, %70, %cst_30 [1] : vector<8x128xf32> to vector<8xf32>
    %72 = vector.shape_cast %71 : vector<8xf32> to vector<8x1xf32>
    %cst_31 = arith.constant dense<0.000000e+00> : vector<1xf32>
    %73 = vector.multi_reduction <add>, %72, %cst_31 [0] : vector<8x1xf32> to vector<1xf32>
    %74 = vector.shape_cast %73 : vector<1xf32> to vector<1x1xf32>
    %cst_32 = arith.constant 9.765625E-4 : f32
    %75 = vector.broadcast %cst_32 : f32 to vector<1x1xf32>
    %76 = arith.mulf %74, %75 : vector<1x1xf32>
    %77 = math.rsqrt %76 : vector<1x1xf32>
    %78 = vector.broadcast %77 : vector<1x1xf32> to vector<8x128xf32>
    %79 = arith.mulf %69, %78 : vector<8x128xf32>
    %80 = arith.mulf %2, %79 : vector<8x128xf32>
    %c0_33 = arith.constant 0 : index
    %c0_34 = arith.constant 0 : index
    %81 = vector.load %arg9[%c0_33, %c0_34] : memref<128x128xf32, #tpu.memory_space<vmem>>, vector<128x128xf32>
    %cst_35 = arith.constant dense<0.000000e+00> : vector<8x128xf32>
    %82 = tpu.matmul %80, %81, %cst_35 {dimension_numbers = #tpu.dot_dimension_numbers<[1], [0], [0], [1], [0, 0, 1, 1], [], []>} : vector<8x128xf32>, vector<128x128xf32>, vector<8x128xf32> -> vector<8x128xf32>
    %c0_36 = arith.constant 0 : index
    %c0_37 = arith.constant 0 : index
    %83 = vector.load %arg10[%c0_36, %c0_37] : memref<1x128xf32, #tpu.memory_space<vmem>>, vector<1x128xf32>
    %84 = vector.broadcast %83 : vector<1x128xf32> to vector<8x128xf32>
    %85 = arith.addf %82, %84 : vector<8x128xf32>
    %c0_38 = arith.constant 0 : index
    %c0_39 = arith.constant 0 : index
    %86 = vector.load %arg11[%c0_38, %c0_39] : memref<128x256xf32, #tpu.memory_space<vmem>>, vector<128x256xf32>
    %cst_40 = arith.constant dense<0.000000e+00> : vector<8x256xf32>
    %87 = tpu.matmul %85, %86, %cst_40 {dimension_numbers = #tpu.dot_dimension_numbers<[1], [0], [0], [1], [0, 0, 1, 1], [], []>} : vector<8x128xf32>, vector<128x256xf32>, vector<8x256xf32> -> vector<8x256xf32>
    %c0_41 = arith.constant 0 : index
    %c0_42 = arith.constant 0 : index
    %88 = vector.load %arg12[%c0_41, %c0_42] : memref<1x256xf32, #tpu.memory_space<vmem>>, vector<1x256xf32>
    %89 = vector.broadcast %88 : vector<1x256xf32> to vector<8x256xf32>
    %90 = arith.addf %87, %89 : vector<8x256xf32>
    %91 = vector.extract_strided_slice %90 {offsets = [0, 0], sizes = [8, 128], strides = [1, 1]} : vector<8x256xf32> to vector<8x128xf32>
    %92 = vector.extract_strided_slice %90 {offsets = [0, 128], sizes = [8, 128], strides = [1, 1]} : vector<8x256xf32> to vector<8x128xf32>
    %c0_43 = arith.constant 0 : index
    %c0_44 = arith.constant 0 : index
    %93 = memref.load %arg13[%c0_43, %c0_44] : memref<1x1xf32, #tpu.memory_space<smem>>
    %94 = vector.broadcast %93 : f32 to vector<8x128xf32>
    %95 = arith.mulf %94, %91 : vector<8x128xf32>
    %96 = arith.negf %95 : vector<8x128xf32>
    %97 = math.exp %96 : vector<8x128xf32>
    %cst_45 = arith.constant 1.000000e+00 : f32
    %98 = vector.broadcast %cst_45 : f32 to vector<8x128xf32>
    %99 = arith.addf %98, %97 : vector<8x128xf32>
    %100 = arith.divf %98, %99 : vector<8x128xf32>
    %101 = arith.mulf %91, %100 : vector<8x128xf32>
    %102 = arith.mulf %101, %92 : vector<8x128xf32>
    %103 = arith.addf %80, %102 : vector<8x128xf32>
    %c0_46 = arith.constant 0 : index
    %c0_47 = arith.constant 0 : index
    %c0_48 = arith.constant 0 : index
    %104 = vector.load %arg14[%c0_46, %c0_47, %c0_48] : memref<1x8x128xf32, #tpu.memory_space<vmem>>, vector<1x8x128xf32>
    %105 = vector.shape_cast %104 : vector<1x8x128xf32> to vector<8x128xf32>
    %106 = vector.shape_cast %103 : vector<8x128xf32> to vector<1x8x128xf32>
    tpu.vector_store %arg14[%c0_46, %c0_47, %c0_48], %106 {strides = array<i32>} : memref<1x8x128xf32, #tpu.memory_space<vmem>>, vector<1x8x128xf32>,
    return
  }
  func.func @transform_0(%arg0: i32) -> (i32, i32, i32) {
    %c0_i32 = arith.constant 0 : i32
    %c0_i32_0 = arith.constant 0 : i32
    %c0_i32_1 = arith.constant 0 : i32
    return %arg0, %c0_i32, %c0_i32_0 : i32, i32, i32
  }
  func.func @transform_1(%arg0: i32) -> (i32, i32) {
    %c0_i32 = arith.constant 0 : i32
    %c0_i32_0 = arith.constant 0 : i32
    %c0_i32_1 = arith.constant 0 : i32
    return %c0_i32, %c0_i32_0 : i32, i32
  }
  func.func @transform_2(%arg0: i32) -> (i32, i32) {
    %c0_i32 = arith.constant 0 : i32
    %c0_i32_0 = arith.constant 0 : i32
    %c0_i32_1 = arith.constant 0 : i32
    return %c0_i32, %c0_i32_0 : i32, i32
  }
  func.func @transform_3(%arg0: i32) -> (i32, i32) {
    %c0_i32 = arith.constant 0 : i32
    %c0_i32_0 = arith.constant 0 : i32
    %c0_i32_1 = arith.constant 0 : i32
    return %c0_i32, %c0_i32_0 : i32, i32
  }
  func.func @transform_4(%arg0: i32) -> (i32, i32) {
    %c0_i32 = arith.constant 0 : i32
    %c0_i32_0 = arith.constant 0 : i32
    %c0_i32_1 = arith.constant 0 : i32
    return %c0_i32, %c0_i32_0 : i32, i32
  }
  func.func @transform_5(%arg0: i32) -> (i32, i32) {
    %c0_i32 = arith.constant 0 : i32
    %c0_i32_0 = arith.constant 0 : i32
    %c0_i32_1 = arith.constant 0 : i32
    return %c0_i32, %c0_i32_0 : i32, i32
  }
  func.func @transform_6(%arg0: i32) -> (i32, i32) {
    %c0_i32 = arith.constant 0 : i32
    %c0_i32_0 = arith.constant 0 : i32
    %c0_i32_1 = arith.constant 0 : i32
    return %c0_i32, %c0_i32_0 : i32, i32
  }
  func.func @transform_7(%arg0: i32) -> (i32, i32) {
    %c0_i32 = arith.constant 0 : i32
    %c0_i32_0 = arith.constant 0 : i32
    %c0_i32_1 = arith.constant 0 : i32
    return %c0_i32, %c0_i32_0 : i32, i32
  }
  func.func @transform_8(%arg0: i32) -> (i32, i32) {
    %c0_i32 = arith.constant 0 : i32
    %c0_i32_0 = arith.constant 0 : i32
    %c0_i32_1 = arith.constant 0 : i32
    return %c0_i32, %c0_i32_0 : i32, i32
  }
  func.func @transform_9(%arg0: i32) -> (i32, i32) {
    %c0_i32 = arith.constant 0 : i32
    %c0_i32_0 = arith.constant 0 : i32
    %c0_i32_1 = arith.constant 0 : i32
    return %c0_i32, %c0_i32_0 : i32, i32
  }
  func.func @transform_10(%arg0: i32) -> (i32, i32) {
    %c0_i32 = arith.constant 0 : i32
    %c0_i32_0 = arith.constant 0 : i32
    %c0_i32_1 = arith.constant 0 : i32
    return %c0_i32, %c0_i32_0 : i32, i32
  }
  func.func @transform_11(%arg0: i32) -> (i32, i32) {
    %c0_i32 = arith.constant 0 : i32
    %c0_i32_0 = arith.constant 0 : i32
    %c0_i32_1 = arith.constant 0 : i32
    return %c0_i32, %c0_i32_0 : i32, i32
  }
  func.func @transform_12(%arg0: i32) -> (i32, i32) {
    %c0_i32 = arith.constant 0 : i32
    %c0_i32_0 = arith.constant 0 : i32
    %c0_i32_1 = arith.constant 0 : i32
    return %c0_i32, %c0_i32_0 : i32, i32
  }
  func.func @transform_13(%arg0: i32) -> (i32, i32, i32) {
    %c0_i32 = arith.constant 0 : i32
    %c0_i32_0 = arith.constant 0 : i32
    %c0_i32_1 = arith.constant 0 : i32
    return %arg0, %c0_i32, %c0_i32_0 : i32, i32, i32
  }
}

</mosaic_0001>

<bundles_post_ra>
// kernel: tpu_custom_call.1
= control target key start
LH: loop header
LB: loop body
LE: loop exit
PB: predicated region body
PF: predicated region fallthrough
CT: control target
= control target key end

     0   :  { %s3127_s0 = inlined_call_operand.hbm [shape: f32[2,8,128], index: 0, kind: input, shape index: {}]   ;;  %s3128_s1 = inlined_call_operand.hbm [shape: f32[8,128], index: 1, kind: input, shape index: {}]   ;;  %s3129_s2 = inlined_call_operand.hbm [shape: f32[128,768], index: 2, kind: input, shape index: {}]   ;;  %s3130_s3 = inlined_call_operand.hbm [shape: f32[8,512], index: 3, kind: input, shape index: {}]   ;;  %s3131_s4 = inlined_call_operand.hbm [shape: f32[8,512], index: 4, kind: input, shape index: {}]   ;;  %s3132_s5 = inlined_call_operand.hbm [shape: f32[8,512], index: 5, kind: input, shape index: {}]   ;;  %s3133_s6 = inlined_call_operand.hbm [shape: f32[256,128], index: 6, kind: input, shape index: {}]   ;;  %s3134_s7 = inlined_call_operand.vmem [shape: f32[1,128], index: 7, kind: input, shape index: {}]   ;;  %s3135_s8 = inlined_call_operand.hbm [shape: f32[128,128], index: 8, kind: input, shape index: {}]   ;;  %s3136_s9 = inlined_call_operand.vmem [shape: f32[1,128], index: 9, kind: input, shape index: {}]   ;;  %s3137_s10 = inlined_call_operand.hbm [shape: f32[128,256], index: 10, kind: input, shape index: {}]   ;;  %s3138_s11 = inlined_call_operand.vmem [shape: f32[1,256], index: 11, kind: input, shape index: {}]   ;;  %s3139_s12 = inlined_call_operand.<no memory space> [shape: f32[1,1], index: 12, kind: input, shape index: {}]   ;;  %s3140_s13 = inlined_call_operand.hbm [shape: f32[2,8,128], index: 13, kind: output, shape index: {}]  }
   0x1   :  { %3147 = sst [smem:[#allocation25_spill]] %s3128_s1 }
   0x2   :  { %3148 = sst [smem:[#allocation26_spill]] %s3130_s3 }
   0x3   :  { %3149 = sst [smem:[#allocation27_spill]] %s3132_s5 }
   0x4   :  { %3150 = sst [smem:[#allocation28_spill]] %s3135_s8 }
   0x5   :  { %3151 = sst [smem:[#allocation29_spill]] %s3138_s11 }
   0x6   :  { %3152 = sst [smem:[#allocation30_spill]] %s3140_s13 }
   0x7   :  { %18 = sst [smem:[#allocation2]] %s3139_s12 }
   0x8   :  { %19 = vsyncpa [#allocation4], 0 }
   0x9   :  { %21 = vsyncpa [#allocation4 + $0x1], 0 }
   0xa   :  { %22 = vsyncpa [#allocation7], 0 }
   0xb   :  { %23 = vsyncpa [#allocation10], 0 }
   0xc   :  { %24 = vsyncpa [#allocation13], 0 }
   0xd   :  { %25 = vsyncpa [#allocation16], 0 }
   0xe   :  { %26 = vsyncpa [#allocation5], 0 }
   0xf   :  { %28 = vsyncpa [#allocation5 + $0x1], 0  ;;  %s2685_s27 = smov 0   ;;  %s2687_s28 = smov 0  }
  0x10   :  { %s2689_s29 = smov 0   ;;  %s2691_s30 = smov 0  }
  0x11 LB: > { %s2591_s12 = smov [#allocation6]   ;;  %s2706_s15 = sadd.s32 4294967295, %s2589_s30   ;;  %s2589_s30 = sphi %s2691_s30, %s3185_s30   ;;  %s2585_s29 = sphi %s2689_s29, %s3184_s29   ;;  %s2581_s28 = sphi %s2687_s28, %s3183_s28   ;;  %s2577_s27 = sphi %s2685_s27, %s3182_s27  }
  0x12   : > { %s356_s14 = sshll.u32 %s2591_s12, 4  ;;  %p1768_p0 = scmp.ge.s32.totalorder %s2589_s30, 1  ;;  %s357_s14 = int_to_ptr.vmem [resolvable:$true] %s356_s14 }
  0x13   : > { %p3141_p1 = scmp.eq.s32.totalorder %s2706_s15, 0  ;;  %p343_p2 = scmp.lt.s32.totalorder %s2589_s30, 3 }
  0x14   : > { %s2592_s17 = smov [#allocation9]   ;;  %s2593_s19 = smov [#allocation12]  }
  0x15   : > { %p2711_p3 = pnand %p1768_p0, %p343_p2  ;;  %s380_s18 = sshll.u32 %s2592_s17, 4  ;;  %s2718_s18 = int_to_ptr.vmem [resolvable:$true] %s380_s18 }
  0x16   : > { %s402_s20 = sshll.u32 %s2593_s19, 4  ;;  %s3155_s1 = sld [smem:[#allocation25_spill]]  ;;  %s2726_s20 = int_to_ptr.vmem [resolvable:$true] %s402_s20 }
  0x17   : > { %s3153_s16 = scalar_select %p2711_p3, 1, 0 }
  0x18   : > { %p2135_p5 = pneg %p2711_p3 }
  0x1a   : > { %p2722_p6 = pnand %p2135_p5, %p3141_p1 }
  0x1c   : > { %s2253_s24 = scalar_lea.hbm %s3155_s1, 128  ;;  %p2736_p8 = pneg %p2722_p6 }
  0x1d   : > { %p2254_p7 = scmp.ne.s32.totalorder %s3155_s1, %s2253_s24  ;;  %p2260_p11 = scmp.lt.u32.totalorder %s2253_s24, %s3155_s1 }
  0x1f   : > { %p2256_p9 = pnand %p2736_p8, %p2254_p7 }
  0x21   : > { %p2257_p10 = pneg %p2256_p9 }
  0x23   : > { %p2262_p12 = pnand %p2260_p11, %p2257_p10 }
  0x25   : > { %2265 = shalt.err (!%p2262_p12)
}
  0x26   : > { %s2266_s22 = scalar_lea.vmem %s357_s14, 128  ;;  %p2274_p5 = scmp.lt.s32.totalorder %s357_s14, %s357_s14 }
  0x27   : > { %p2267_p13 = scmp.ne.s32.totalorder %s357_s14, %s2266_s22  ;;  %p2275_p4 = scmp.lt.s32.totalorder %s2266_s22, %s2266_s22 }
  0x29   : > { %p2269_p0 = pnand %p2267_p13, %p2736_p8  ;;  %p2276_p1 = por %p2275_p4, %p2274_p5 }
  0x2b   : > { %p2270_p2 = pneg %p2269_p0 }
  0x2d   : > { %p2277_p3 = pnand %p2276_p1, %p2270_p2 }
  0x2f   : > { %2280 = shalt.err (!%p2277_p3)
}
  0x30   : > { %2138 = dma.hbm_to_vmem [thread:$0]  (!%p2722_p6), %s3155_s1, 128, %s357_s14, [#allocation7]  }
  0x31   : > { %s3157_s3 = sld [smem:[#allocation26_spill]] }
  0x37   : > { %s2281_s17 = scalar_lea.hbm %s3157_s3, 512 }
  0x38   : > { %p2282_p7 = scmp.ne.s32.totalorder %s3157_s3, %s2281_s17  ;;  %p2288_p1 = scmp.lt.u32.totalorder %s2281_s17, %s3157_s3 }
  0x3a   : > { %p2284_p9 = pnand %p2282_p7, %p2736_p8 }
  0x3c   : > { %p2285_p4 = pneg %p2284_p9 }
  0x3e   : > { %p2290_p3 = pnand %p2288_p1, %p2285_p4 }
  0x40   : > { %2293 = shalt.err (!%p2290_p3)
}
  0x41   : > { %s2294_s14 = scalar_lea.vmem %s2718_s18, 512  ;;  %p2302_p13 = scmp.lt.s32.totalorder %s2718_s18, %s2718_s18 }
  0x42   : > { %p2295_p10 = scmp.ne.s32.totalorder %s2718_s18, %s2294_s14  ;;  %p2303_p0 = scmp.lt.s32.totalorder %s2294_s14, %s2294_s14 }
  0x44   : > { %p2297_p11 = pnand %p2295_p10, %p2736_p8  ;;  %p2304_p2 = por %p2303_p0, %p2302_p13 }
  0x46   : > { %p2298_p12 = pneg %p2297_p11 }
  0x48   : > { %p2305_p5 = pnand %p2304_p2, %p2298_p12 }
  0x4a   : > { %2308 = shalt.err (!%p2305_p5)
}
  0x4b   : > { %2144 = dma.hbm_to_vmem [thread:$0]  (!%p2722_p6), %s3157_s3, 512, %s2718_s18, [#allocation10]  }
  0x4c   : > { %s3158_s5 = sld [smem:[#allocation27_spill]] }
  0x52   : > { %s2309_s24 = scalar_lea.hbm %s3158_s5, 512 }
  0x53   : > { %p2310_p7 = scmp.ne.s32.totalorder %s3158_s5, %s2309_s24  ;;  %p2316_p1 = scmp.lt.u32.totalorder %s2309_s24, %s3158_s5 }
  0x55   : > { %p2312_p9 = pnand %p2310_p7, %p2736_p8 }
  0x57   : > { %p2313_p4 = pneg %p2312_p9 }
  0x59   : > { %p2318_p3 = pnand %p2316_p1, %p2313_p4 }
  0x5b   : > { %2321 = shalt.err (!%p2318_p3)
}
  0x5c   : > { %s2322_s18 = scalar_lea.vmem %s2726_s20, 512  ;;  %p2330_p13 = scmp.lt.s32.totalorder %s2726_s20, %s2726_s20 }
  0x5d   : > { %p2323_p10 = scmp.ne.s32.totalorder %s2726_s20, %s2322_s18  ;;  %p2331_p0 = scmp.lt.s32.totalorder %s2322_s18, %s2322_s18 }
  0x5f   : > { %p2325_p11 = pnand %p2323_p10, %p2736_p8  ;;  %p2332_p2 = por %p2331_p0, %p2330_p13 }
  0x61   : > { %p2326_p12 = pneg %p2325_p11 }
  0x63   : > { %p2333_p5 = pnand %p2332_p2, %p2326_p12 }
  0x65   : > { %2336 = shalt.err (!%p2333_p5)
}
  0x66   : > { %2150 = dma.hbm_to_vmem [thread:$0]  (!%p2722_p6), %s3158_s5, 512, %s2726_s20, [#allocation13]  }
  0x67   : > { %s2594_s13 = smov [#allocation15]   ;;  %s2595_s25 = smov [#allocation8]  }
  0x68   : > { %s428_s23 = sshll.u32 %s2594_s13, 4  ;;  %s366_s24 = sshll.u32 %s2595_s25, 4  ;;  %s429_s23 = int_to_ptr.vmem [resolvable:$true] %s428_s23  ;;  %s367_s24 = int_to_ptr.vmem [resolvable:$true] %s366_s24 }
  0x69   : > { %s3159_s8 = sld [smem:[#allocation28_spill]] }
  0x6f   : > { %s2337_s19 = scalar_lea.hbm %s3159_s8, 2048 }
  0x70   : > { %p2338_p7 = scmp.ne.s32.totalorder %s3159_s8, %s2337_s19  ;;  %p2344_p1 = scmp.lt.u32.totalorder %s2337_s19, %s3159_s8 }
  0x72   : > { %p2340_p9 = pnand %p2338_p7, %p2736_p8 }
  0x74   : > { %p2341_p4 = pneg %p2340_p9 }
  0x76   : > { %p2346_p3 = pnand %p2344_p1, %p2341_p4 }
  0x78   : > { %2349 = shalt.err (!%p2346_p3)
}
  0x79   : > { %s2350_s20 = scalar_lea.vmem %s429_s23, 2048  ;;  %p2358_p13 = scmp.lt.s32.totalorder %s429_s23, %s429_s23 }
  0x7a   : > { %p2351_p10 = scmp.ne.s32.totalorder %s429_s23, %s2350_s20  ;;  %p2359_p0 = scmp.lt.s32.totalorder %s2350_s20, %s2350_s20 }
  0x7c   : > { %p2353_p11 = pnand %p2351_p10, %p2736_p8  ;;  %p2360_p2 = por %p2359_p0, %p2358_p13 }
  0x7e   : > { %p2354_p12 = pneg %p2353_p11 }
  0x80   : > { %p2361_p5 = pnand %p2360_p2, %p2354_p12 }
  0x82   : > { %2364 = shalt.err (!%p2361_p5)
}
  0x83   : > { %s3144_s11 = smov 128   ;;  %s3145_s13 = smov 8  }
  0x84   : > { %2156 = dma.hbm_to_vmem [thread:$0]  (!%p2722_p6), %s3159_s8, 2048, %s429_s23, [#allocation16], %s3144_s11, %s3144_s11, %s3145_s13  }
  0x85   : > { %s2365_s19 = scalar_lea.hbm %s3129_s2, 12288 }
  0x86   : > { %p2366_p7 = scmp.ne.s32.totalorder %s3129_s2, %s2365_s19  ;;  %p2372_p1 = scmp.lt.u32.totalorder %s2365_s19, %s3129_s2 }
  0x88   : > { %p2368_p9 = pnand %p2366_p7, %p2736_p8 }
  0x8a   : > { %p2369_p4 = pneg %p2368_p9 }
  0x8c   : > { %p2374_p3 = pnand %p2372_p1, %p2369_p4 }
  0x8e   : > { %2377 = shalt.err (!%p2374_p3)
}
  0x8f   : > { %s2378_s1 = scalar_lea.vmem %s367_s24, 12288  ;;  %p2386_p13 = scmp.lt.s32.totalorder %s367_s24, %s367_s24 }
  0x90   : > { %p2379_p10 = scmp.ne.s32.totalorder %s367_s24, %s2378_s1  ;;  %p2387_p0 = scmp.lt.s32.totalorder %s2378_s1, %s2378_s1 }
  0x92   : > { %p2381_p11 = pnand %p2379_p10, %p2736_p8  ;;  %p2388_p2 = por %p2387_p0, %p2386_p13 }
  0x94   : > { %p2382_p12 = pneg %p2381_p11 }
  0x96   : > { %p2389_p5 = pnand %p2388_p2, %p2382_p12 }
  0x98   : > { %2392 = shalt.err (!%p2389_p5)
}
  0x99   : > { %s2598_s23 = smov 768   ;;  %s2599_s25 = smov 48  }
  0x9a   : > { %2141 = dma.hbm_to_vmem [thread:$0]  (!%p2722_p6), %s3129_s2, 12288, %s367_s24, [#allocation7], %s2598_s23, %s2598_s23, %s2599_s25  }
  0x9b   : > { %s2600_s19 = smov [#allocation11]   ;;  %s2601_s18 = smov [#allocation14]  }
  0x9c   : > { %s391_s22 = sshll.u32 %s2600_s19, 4  ;;  %s412_s14 = sshll.u32 %s2601_s18, 4  ;;  %s392_s22 = int_to_ptr.vmem [resolvable:$true] %s391_s22  ;;  %s413_s14 = int_to_ptr.vmem [resolvable:$true] %s412_s14 }
  0x9d   : > { %s2393_s1 = scalar_lea.hbm %s3131_s4, 512 }
  0x9e   : > { %p2394_p7 = scmp.ne.s32.totalorder %s3131_s4, %s2393_s1  ;;  %p2400_p1 = scmp.lt.u32.totalorder %s2393_s1, %s3131_s4 }
  0xa0   : > { %p2396_p9 = pnand %p2394_p7, %p2736_p8 }
  0xa2   : > { %p2397_p4 = pneg %p2396_p9 }
  0xa4   : > { %p2402_p3 = pnand %p2400_p1, %p2397_p4 }
  0xa6   : > { %2405 = shalt.err (!%p2402_p3)
}
  0xa7   : > { %s2406_s24 = scalar_lea.vmem %s392_s22, 512  ;;  %p2414_p13 = scmp.lt.s32.totalorder %s392_s22, %s392_s22 }
  0xa8   : > { %p2407_p10 = scmp.ne.s32.totalorder %s392_s22, %s2406_s24  ;;  %p2415_p0 = scmp.lt.s32.totalorder %s2406_s24, %s2406_s24 }
  0xaa   : > { %p2409_p11 = pnand %p2407_p10, %p2736_p8  ;;  %p2416_p2 = por %p2415_p0, %p2414_p13 }
  0xac   : > { %p2410_p12 = pneg %p2409_p11 }
  0xae   : > { %p2417_p5 = pnand %p2416_p2, %p2410_p12 }
  0xb0   : > { %2420 = shalt.err (!%p2417_p5)
}
  0xb1   : > { %2147 = dma.hbm_to_vmem [thread:$0]  (!%p2722_p6), %s3131_s4, 512, %s392_s22, [#allocation10]  }
  0xb2   : > { %s2421_s13 = scalar_lea.hbm %s3133_s6, 4096 }
  0xb3   : > { %p2422_p7 = scmp.ne.s32.totalorder %s3133_s6, %s2421_s13  ;;  %p2428_p1 = scmp.lt.u32.totalorder %s2421_s13, %s3133_s6 }
  0xb5   : > { %p2424_p9 = pnand %p2422_p7, %p2736_p8 }
  0xb7   : > { %p2425_p4 = pneg %p2424_p9 }
  0xb9   : > { %p2430_p3 = pnand %p2428_p1, %p2425_p4 }
  0xbb   : > { %2433 = shalt.err (!%p2430_p3)
}
  0xbc   : > { %s2434_s19 = scalar_lea.vmem %s413_s14, 4096  ;;  %p2442_p13 = scmp.lt.s32.totalorder %s413_s14, %s413_s14 }
  0xbd   : > { %p2435_p10 = scmp.ne.s32.totalorder %s413_s14, %s2434_s19  ;;  %p2443_p0 = scmp.lt.s32.totalorder %s2434_s19, %s2434_s19 }
  0xbf   : > { %p2437_p11 = pnand %p2435_p10, %p2736_p8  ;;  %p2444_p2 = por %p2443_p0, %p2442_p13 }
  0xc1   : > { %p2438_p12 = pneg %p2437_p11 }
  0xc3   : > { %p2445_p5 = pnand %p2444_p2, %p2438_p12 }
  0xc5   : > { %2448 = shalt.err (!%p2445_p5)
}
  0xc6   : > { %s3160_s22 = smov 8   ;;  %s3161_s18 = smov 128  }
  0xc7   : > { %2153 = dma.hbm_to_vmem [thread:$0]  (!%p2722_p6), %s3133_s6, 4096, %s413_s14, [#allocation13], %s3161_s18, %s3161_s18, %s3160_s22  }
  0xc8   : > { %s2602_s24 = smov [#allocation17]   ;;  %s2449_s8 = scalar_lea.hbm %s3137_s10, 4096 }
  0xc9   : > { %s444_s3 = sshll.u32 %s2602_s24, 4  ;;  %p2450_p7 = scmp.ne.s32.totalorder %s3137_s10, %s2449_s8  ;;  %s445_s3 = int_to_ptr.vmem [resolvable:$true] %s444_s3 }
  0xca   : > { %p2456_p1 = scmp.lt.u32.totalorder %s2449_s8, %s3137_s10 }
  0xcb   : > { %p2452_p9 = pnand %p2450_p7, %p2736_p8 }
  0xcd   : > { %p2453_p4 = pneg %p2452_p9 }
  0xcf   : > { %p2458_p3 = pnand %p2456_p1, %p2453_p4 }
  0xd1   : > { %2461 = shalt.err (!%p2458_p3)
}
  0xd2   : > { %s2462_s14 = scalar_lea.vmem %s445_s3, 4096  ;;  %p2470_p13 = scmp.lt.s32.totalorder %s445_s3, %s445_s3 }
  0xd3   : > { %p2463_p10 = scmp.ne.s32.totalorder %s445_s3, %s2462_s14  ;;  %p2471_p0 = scmp.lt.s32.totalorder %s2462_s14, %s2462_s14 }
  0xd5   : > { %p2465_p11 = pnand %p2463_p10, %p2736_p8  ;;  %p2472_p2 = por %p2471_p0, %p2470_p13 }
  0xd7   : > { %p2466_p12 = pneg %p2465_p11 }
  0xd9   : > { %p2473_p5 = pnand %p2472_p2, %p2466_p12 }
  0xdb   : > { %2476 = shalt.err (!%p2473_p5)
}
  0xdc   : > { %s2603_s17 = smov 256   ;;  %s2604_s12 = smov 16  }
  0xdd   : > { %2159 = dma.hbm_to_vmem [thread:$0]  (!%p2722_p6), %s3137_s10, 4096, %s445_s3, [#allocation16], %s2603_s17, %s2603_s17, %s2604_s12  }
  0xde   : > { %s1767_s18 = sadd.s32 4294967294, %s2589_s30   ;;  %s2896_s20 = sadd.s32 1, %s2589_s30  }
  0xdf   : > { %s38_s1 = ssub.s32 %s2589_s30, %s2896_s20  ;;  %s41_s24 = sadd.s32 1, %s2585_s29 }
  0xe0   : > { %p39_p8 = scmp.eq.s32.totalorder %s38_s1, 0  ;;  %p48_p7 = scmp.ne.s32.totalorder %s2585_s29, %s2581_s28 }
  0xe1   : > { %p49_p9 = scmp.eq.s32.totalorder %s2589_s30, 0  ;;  %p54_p4 = scmp.ne.s32.totalorder %s2581_s28, %s2577_s27 }
  0xe2   : > { %s2907_s11 = scalar_select %p39_p8, %s2585_s29, %s41_s24  }
  0xe3   : > { %p2909_p1 = por %p49_p9, %p48_p7  ;;  %p3163_p3 = scmp.eq.s32.totalorder %s2706_s15, 0 }
  0xe4   : > { %p330_p10 = scmp.eq.s32.totalorder %s2706_s15, 1  ;;  %p336_p11 = scmp.eq.s32.totalorder %s1767_s18, 1 }
  0xe5   : > { %p2915_p6 = por %p3163_p3, %p54_p4  ;;  %p2176_p12 = scmp.lt.s32.totalorder %s2589_s30, 2 }
  0xe6   : > { %s464_s5 = sand.u32 1, %s2585_s29   ;;  %p2922_p13 = por %p330_p10, %p48_p7 }
  0xe7   : > { %p2926_p0 = por %p336_p11, %p54_p4  ;;  %s1778_s23 = sshll.u32 %s464_s5, 3 }
  0xe8   : > { %s3165_s8 = scalar_select %p2922_p13, 1, 0 }
  0xe9   : > { %s3166_s13 = scalar_select %p2926_p0, 1, 0 }
  0xea   : > { %s1779_s25 = sshll.u32 %s2589_s30, 7  ;;  %s468_s12 = scalar_lea.vmem [#allocation3], %s1778_s23 }
  0xeb   : > { %s2934_s17 = scalar_lea.hbm %s3127_s0, %s1779_s25  ;;  %s475_s19 = sshll.u32 %s468_s12, 4  ;;  %s2936_s19 = int_to_ptr.vmem [resolvable:$true] %s475_s19 }
  0xec   : > { %p2940_p2 = pnand %p2176_p12, %p2909_p1  ;;  %s465_s18 = scalar_lea.sflag [#allocation4], %s464_s5 }
  0xed   : > { %s2477_s1 = scalar_lea.hbm %s2934_s17, 128  ;;  %s2482_s25 = scalar_lea.hbm %s3127_s0, 256 }
  0xee   : > { %p2478_p5 = scmp.ne.s32.totalorder %s2934_s17, %s2477_s1  ;;  %p2479_p8 = pneg %p2940_p2 }
  0xef   : > { %p2483_p4 = scmp.lt.u32.totalorder %s2934_s17, %s3127_s0  ;;  %p2484_p1 = scmp.lt.u32.totalorder %s2482_s25, %s2477_s1 }
  0xf0   : > { %p2480_p7 = pnand %p2479_p8, %p2478_p5  ;;  %p2486_p10 = scmp.lt.u32.totalorder %s2477_s1, %s2934_s17 }
  0xf1   : > { %p2485_p3 = por %p2484_p1, %p2483_p4 }
  0xf2   : > { %p2481_p9 = pneg %p2480_p7 }
  0xf3   : > { %p2487_p11 = por %p2486_p10, %p2485_p3 }
  0xf5   : > { %p2488_p12 = pnand %p2487_p11, %p2481_p9 }
  0xf7   : > { %2491 = shalt.err (!%p2488_p12)
}
  0xf8   : > { %s2492_s5 = scalar_lea.vmem %s2936_s19, 128  ;;  %s2605_s14 = smov [#allocation3]  }
  0xf9   : > { %p2493_p5 = scmp.ne.s32.totalorder %s2936_s19, %s2492_s5  ;;  %s2497_s12 = sshll.u32 %s2605_s14, 4  ;;  %s2498_s12 = int_to_ptr.vmem [resolvable:$false] %s2497_s12 }
  0xfa   : > { %s2499_s24 = scalar_lea.vmem %s2498_s12, 256  ;;  %p2500_p13 = scmp.lt.s32.totalorder %s2936_s19, %s2498_s12 }
  0xfb   : > { %p2495_p7 = pnand %p2493_p5, %p2479_p8  ;;  %p2501_p4 = scmp.lt.s32.totalorder %s2499_s24, %s2492_s5 }
  0xfd   : > { %p2496_p0 = pneg %p2495_p7  ;;  %p2502_p1 = por %p2501_p4, %p2500_p13 }
  0xff   : > { %p2503_p3 = pnand %p2502_p1, %p2496_p0 }
 0x101   : > { %2506 = shalt.err (!%p2503_p3)
}
 0x102   : > { %2163 = dma.hbm_to_vmem [thread:$0]  (!%p2940_p2), %s2934_s17, 128, %s2936_s19, %s465_s18  }
 0x103   : > { %p3168_p9 = scmp.ne.s32.totalorder %s3153_s16, 0 }
 0x104   : > { %s2972_s1 = sand.u32 (!%p3168_p9), 1, %s2581_s28  }
 0x105   : > { %484 = sbr.rel (%p3168_p9) target bundleno = 2423 (0x977), region = 72  ;;  %s1781_s23 = sshll.u32 (!%p3168_p9), %s2972_s1, 3 }
 0x106   : > { %s487_s25 = scalar_lea.sflag (!%p3168_p9), [#allocation4], %s2972_s1  ;;  %s490_s21 = scalar_lea.vmem (!%p3168_p9), [#allocation3], %s1781_s23 }
 0x10c   : > { %2552 = dma.done.wait (%p2915_p6), %s487_s25, 128  }
 0x10d   : > { %2554 = vsyncadd (%p2915_p6), %s487_s25, 4294967168  ;;  %p3169_p13 = scmp.eq.s32.totalorder %s2706_s15, 0 }
 0x10f   : > { %2556 = dma.done.wait (%p3169_p13), [#allocation7], 12416   ;;  %p3170_p0 = pmov %p3169_p13 }
 0x111   : > { %2558 = vsyncadd (%p3170_p0), [#allocation7], 4294954880  ;;  %p3171_p2 = pmov %p3170_p0 }
 0x112   : > { %p3172_p8 = pmov %p3170_p0 }
 0x113   : > { %2560 = dma.done.wait (%p3171_p2), [#allocation10], 1024  }
 0x114   : > { %2562 = vsyncadd (%p3172_p8), [#allocation10], 4294966272  ;;  %p3173_p10 = pmov %p3170_p0 }
 0x115   : > { %p3174_p11 = pmov %p3170_p0 }
 0x116   : > { %2564 = dma.done.wait (%p3173_p10), [#allocation13], 4608  }
 0x117   : > { %2566 = vsyncadd (%p3174_p11), [#allocation13], 4294962688  ;;  %p3175_p6 = pmov %p3170_p0 }
 0x118   : > { %p3176_p12 = pmov %p3170_p0 }
 0x119   : > { %2568 = dma.done.wait (%p3175_p6), [#allocation16], 6144  }
 0x11a   : > { %2570 = vsyncadd (%p3176_p12), [#allocation16], 4294961152  ;;  %v2998_v0 = vld [vmem:[%s490_s21] sm:$0xff]  ;;  %v587_v2 = vld [vmem:[#allocation8 + $0x38] sm:$0xff]  ;;  %s2607_s16 = smov 127   ;;  %s2608_s3 = smov 1  }
 0x11b   : > { %v581_v1 = vld [vmem:[#allocation8 + $0x8] sm:$0xff]  ;;  %v567_v3 = vmul.f32 %v2998_v0, %v2998_v0  ;;  %v580_v5 = vld [vmem:[#allocation8] sm:$0xff]  ;;  %v586_v6 = vld [vmem:[#allocation8 + $0x30] sm:$0xff]  ;;  %vm2609_vm0 = vmmov 0   ;;  %vm1023_vm4 = vcmask 64512   ;;  %s1594_s26 = sld [smem:[#allocation2]] }
 0x11c   : > { %v1915_v4 = vpack.c.bf16 %v587_v2, %v581_v1  ;;  %v583_v7 = vld [vmem:[#allocation8 + $0x18] sm:$0xff]  ;;  %v1917_v8 = vpack.c.bf16 %v586_v6, %v580_v5  ;;  %v589_v9 = vld [vmem:[#allocation8 + $0x48] sm:$0xff]  ;;  %v582_v10 = vld [vmem:[#allocation8 + $0x10] sm:$0xff]  ;;  %s3177_s12 = sld [smem:[#allocation29_spill]]  ;;  %s1797_s24 = sshll.u32 %s2706_s15, 7 }
 0x11d   : > { %v588_v11 = vld [vmem:[#allocation8 + $0x40] sm:$0xff]  ;;  %568 = vadd.xlane.f32.xlu0 %v567_v3  ;;  %v1947_v12 = vpack.c.bf16 %v589_v9, %v583_v7  ;;  %v593_v14 = vld [vmem:[#allocation8 + $0x68] sm:$0xff]  ;;  %v599_v15 = vld [vmem:[#allocation8 + $0x98] sm:$0xff]  ;;  %v2606_v9 = vmov 0.0   ;;  %s564_s25 = scalar_lea.vmem [#allocation18], %s1781_s23  ;;  %s3178_s17 = sld [smem:[#allocation30_spill]] }
 0x11e   : > { %1916 = vmatprep.subr.bf16.mxu0 %v1915_v4  ;;  %v1949_v13 = vpack.c.bf16 %v588_v11, %v582_v10  ;;  %v1919_v16 = vpack.c.bf16 %v599_v15, %v593_v14  ;;  %v592_v17 = vld [vmem:[#allocation8 + $0x60] sm:$0xff]  ;;  %v598_v18 = vld [vmem:[#allocation8 + $0x90] sm:$0xff]  ;;  %v595_v19 = vld [vmem:[#allocation8 + $0x78] sm:$0xff]  ;;  %740 = vmatprep.mubr.f32.mxu0 %v2606_v9  ;;  %s1621_s21 = sshll.u32 %s564_s25, 4  ;;  %s1608_s22 = scalar_lea.sflag [#allocation5], %s2972_s1  ;;  %s3085_s21 = int_to_ptr.vmem [resolvable:$true] %s1621_s21 }
 0x11f   : > { %1918 = vmatpush1.bf16.msra.mxu0 %v1917_v8  ;;  %1948 = vmatprep.subr.bf16.mxu1 %v1947_v12  ;;  %v1921_v20 = vpack.c.bf16 %v598_v18, %v592_v17  ;;  %v601_v21 = vld [vmem:[#allocation8 + $0xa8] sm:$0xff]  ;;  %v594_v22 = vld [vmem:[#allocation8 + $0x70] sm:$0xff]  ;;  %v600_v23 = vld [vmem:[#allocation8 + $0xa0] sm:$0xff]  ;;  %s2507_s18 = scalar_lea.vmem %s3085_s21, 128  ;;  %p3179_p7 = scmp.ne.s32.totalorder %s3165_s8, 0 }
 0x120   : > { %1950 = vmatpush1.bf16.msra.mxu1 %v1949_v13  ;;  %1920 = vmatprep.subr.bf16.mxu0 %v1919_v16  ;;  %v1951_v24 = vpack.c.bf16 %v601_v21, %v595_v19  ;;  %v1953_v25 = vpack.c.bf16 %v600_v23, %v594_v22  ;;  %v605_v26 = vld [vmem:[#allocation8 + $0xc8] sm:$0xff]  ;;  %v611_v27 = vld [vmem:[#allocation8 + $0xf8] sm:$0xff]  ;;  %v604_v29 = vld [vmem:[#allocation8 + $0xc0] sm:$0xff]  ;;  %p2508_p5 = scmp.ne.s32.totalorder %s3085_s21, %s2507_s18  ;;  %s2611_s15 = smov [#allocation18]  }
 0x121   : > { %v1923_v28 = vpack.c.bf16 %v611_v27, %v605_v26  ;;  %v610_v30 = vld [vmem:[#allocation8 + $0xf0] sm:$0xff]  ;;  %v607_v31 = vld [vmem:[#allocation8 + $0xd8] sm:$0xff]  ;;  %v613_v33 = vld [vmem:[#allocation8 + $0x108] sm:$0xff]  ;;  %811 = vmatprep.mubr.f32.mxu1 %v2606_v9  ;;  %s2511_s23 = sshll.u32 %s2611_s15, 4  ;;  %s2512_s23 = int_to_ptr.vmem [resolvable:$false] %s2511_s23 }
 0x122   : > { %1952 = vmatprep.subr.bf16.mxu1 %v1951_v24  ;;  %v1925_v32 = vpack.c.bf16 %v610_v30, %v604_v29  ;;  %v606_v34 = vld [vmem:[#allocation8 + $0xd0] sm:$0xff]  ;;  %v612_v35 = vld [vmem:[#allocation8 + $0x100] sm:$0xff]  ;;  %v1955_v36 = vpack.c.bf16 %v613_v33, %v607_v31  ;;  %v617_v38 = vld [vmem:[#allocation8 + $0x128] sm:$0xff]  ;;  %p2509_p4 = pnand %p2508_p5, %p3179_p7  ;;  %p2514_p3 = scmp.lt.s32.totalorder %s3085_s21, %s2512_s23 }
 0x123   : > { %1922 = vmatpush1.bf16.msra.mxu0 %v1921_v20  ;;  %v1957_v37 = vpack.c.bf16 %v612_v35, %v606_v34  ;;  %v623_v39 = vld [vmem:[#allocation8 + $0x158] sm:$0xff]  ;;  %v616_v41 = vld [vmem:[#allocation8 + $0x120] sm:$0xff]  ;;  %v622_v42 = vld [vmem:[#allocation8 + $0x150] sm:$0xff]  ;;  %s3083_s19 = scalar_lea.hbm %s3178_s17, %s1797_s24 }
 0x124   : > { %1954 = vmatpush1.bf16.msra.mxu1 %v1953_v25  ;;  %1924 = vmatprep.subr.bf16.mxu0 %v1923_v28  ;;  %v1927_v40 = vpack.c.bf16 %v623_v39, %v617_v38  ;;  %v619_v43 = vld [vmem:[#allocation8 + $0x138] sm:$0xff]  ;;  %v1929_v44 = vpack.c.bf16 %v622_v42, %v616_v41  ;;  %v625_v45 = vld [vmem:[#allocation8 + $0x168] sm:$0xff]  ;;  %v618_v46 = vld [vmem:[#allocation8 + $0x130] sm:$0xff]  ;;  %p2510_p1 = pneg %p2509_p4 }
 0x125   : > { %1956 = vmatprep.subr.bf16.mxu1 %v1955_v36  ;;  %v624_v47 = vld [vmem:[#allocation8 + $0x160] sm:$0xff]  ;;  %v1959_v48 = vpack.c.bf16 %v625_v45, %v619_v43  ;;  %v629_v50 = vld [vmem:[#allocation8 + $0x188] sm:$0xff]  ;;  %v635_v51 = vld [vmem:[#allocation8 + $0x1b8] sm:$0xff] }
 0x126   : > { %v1961_v49 = vpack.c.bf16 %v624_v47, %v618_v46  ;;  %v1931_v52 = vpack.c.bf16 %v635_v51, %v629_v50  ;;  %v628_v53 = vld [vmem:[#allocation8 + $0x180] sm:$0xff]  ;;  %v634_v54 = vld [vmem:[#allocation8 + $0x1b0] sm:$0xff]  ;;  %v631_v55 = vld [vmem:[#allocation8 + $0x198] sm:$0xff] }
 0x127   : > { %1926 = vmatpush1.bf16.msra.mxu0 %v1925_v32  ;;  %v1933_v56 = vpack.c.bf16 %v634_v54, %v628_v53  ;;  %v637_v57 = vld [vmem:[#allocation8 + $0x1c8] sm:$0xff]  ;;  %v630_v58 = vld [vmem:[#allocation8 + $0x190] sm:$0xff]  ;;  %v636_v59 = vld [vmem:[#allocation8 + $0x1c0] sm:$0xff] }
 0x128   : > { %1958 = vmatpush1.bf16.msra.mxu1 %v1957_v37  ;;  %1928 = vmatprep.subr.bf16.mxu0 %v1927_v40  ;;  %v1963_v60 = vpack.c.bf16 %v637_v57, %v631_v55  ;;  %v1965_v61 = vpack.c.bf16 %v636_v59, %v630_v58  ;;  %v641_v62 = vld [vmem:[#allocation8 + $0x1e8] sm:$0xff]  ;;  %v647_v63 = vld [vmem:[#allocation8 + $0x218] sm:$0xff]  ;;  %v640_v2 = vld [vmem:[#allocation8 + $0x1e0] sm:$0xff] }
 0x129   : > { %1960 = vmatprep.subr.bf16.mxu1 %v1959_v48  ;;  %v1935_v1 = vpack.c.bf16 %v647_v63, %v641_v62  ;;  %v646_v3 = vld [vmem:[#allocation8 + $0x210] sm:$0xff]  ;;  %v643_v4 = vld [vmem:[#allocation8 + $0x1f8] sm:$0xff]  ;;  %v649_v6 = vld [vmem:[#allocation8 + $0x228] sm:$0xff] }
 0x12a   : > { %v1937_v5 = vpack.c.bf16 %v646_v3, %v640_v2  ;;  %v642_v7 = vld [vmem:[#allocation8 + $0x1f0] sm:$0xff]  ;;  %v648_v8 = vld [vmem:[#allocation8 + $0x220] sm:$0xff]  ;;  %v1967_v10 = vpack.c.bf16 %v649_v6, %v643_v4  ;;  %v653_v12 = vld [vmem:[#allocation8 + $0x248] sm:$0xff] }
 0x12b   : > { %1930 = vmatpush1.bf16.msra.mxu0 %v1929_v44  ;;  %v1969_v11 = vpack.c.bf16 %v648_v8, %v642_v7  ;;  %v659_v13 = vld [vmem:[#allocation8 + $0x278] sm:$0xff]  ;;  %v652_v14 = vld [vmem:[#allocation8 + $0x240] sm:$0xff]  ;;  %v658_v16 = vld [vmem:[#allocation8 + $0x270] sm:$0xff] }
 0x12c   : > { %1962 = vmatpush1.bf16.msra.mxu1 %v1961_v49  ;;  %1932 = vmatprep.subr.bf16.mxu0 %v1931_v52  ;;  %v1939_v15 = vpack.c.bf16 %v659_v13, %v653_v12  ;;  %v655_v17 = vld [vmem:[#allocation8 + $0x258] sm:$0xff]  ;;  %v661_v18 = vld [vmem:[#allocation8 + $0x288] sm:$0xff]  ;;  %v1941_v19 = vpack.c.bf16 %v658_v16, %v652_v14  ;;  %v654_v21 = vld [vmem:[#allocation8 + $0x250] sm:$0xff] }
 0x12d   : > { %1964 = vmatprep.subr.bf16.mxu1 %v1963_v60  ;;  %v1971_v20 = vpack.c.bf16 %v661_v18, %v655_v17  ;;  %v660_v22 = vld [vmem:[#allocation8 + $0x280] sm:$0xff]  ;;  %v665_v23 = vld [vmem:[#allocation8 + $0x2a8] sm:$0xff]  ;;  %v671_v25 = vld [vmem:[#allocation8 + $0x2d8] sm:$0xff] }
 0x12e   : > { %v1973_v24 = vpack.c.bf16 %v660_v22, %v654_v21  ;;  %v664_v26 = vld [vmem:[#allocation8 + $0x2a0] sm:$0xff]  ;;  %v670_v27 = vld [vmem:[#allocation8 + $0x2d0] sm:$0xff]  ;;  %v1943_v28 = vpack.c.bf16 %v671_v25, %v665_v23  ;;  %v667_v29 = vld [vmem:[#allocation8 + $0x2b8] sm:$0xff] }
 0x12f   : > { %1934 = vmatpush1.bf16.msra.mxu0 %v1933_v56  ;;  %v673_v30 = vld [vmem:[#allocation8 + $0x2e8] sm:$0xff]  ;;  %v666_v31 = vld [vmem:[#allocation8 + $0x2b0] sm:$0xff]  ;;  %v1945_v32 = vpack.c.bf16 %v670_v27, %v664_v26  ;;  %v672_v34 = vld [vmem:[#allocation8 + $0x2e0] sm:$0xff] }
 0x130   : > { %1966 = vmatpush1.bf16.msra.mxu1 %v1965_v61  ;;  %1936 = vmatprep.subr.bf16.mxu0 %v1935_v1  ;;  %v1975_v33 = vpack.c.bf16 %v673_v30, %v667_v29  ;;  %v585_v35 = vld [vmem:[#allocation8 + $0x28] sm:$0xff]  ;;  %v591_v36 = vld [vmem:[#allocation8 + $0x58] sm:$0xff]  ;;  %v1977_v38 = vpack.c.bf16 %v672_v34, %v666_v31  ;;  %v584_v47 = vld [vmem:[#allocation8 + $0x20] sm:$0xff] }
 0x131   : > { %1968 = vmatprep.subr.bf16.mxu1 %v1967_v10  ;;  %v1979_v37 = vpack.c.bf16 %v591_v36, %v585_v35  ;;  %v590_v48 = vld [vmem:[#allocation8 + $0x50] sm:$0xff]  ;;  %v3005_v50 = vld [vmem:[#allocation6] sm:$0xff]  ;;  %v597_v51 = vld [vmem:[#allocation8 + $0x88] sm:$0xff] }
 0x132   : > { %v603_v52 = vld [vmem:[#allocation8 + $0xb8] sm:$0xff]  ;;  %v1981_v54 = vpack.c.bf16 %v590_v48, %v584_v47  ;;  %v596_v57 = vld [vmem:[#allocation8 + $0x80] sm:$0xff]  ;;  %v602_v58 = vld [vmem:[#allocation8 + $0xb0] sm:$0xff] }
 0x133   : > { %1938 = vmatpush1.bf16.msra.mxu0 %v1937_v5  ;;  %v1983_v56 = vpack.c.bf16 %v603_v52, %v597_v51  ;;  %v609_v59 = vld [vmem:[#allocation8 + $0xe8] sm:$0xff]  ;;  %v615_v60 = vld [vmem:[#allocation8 + $0x118] sm:$0xff]  ;;  %v1985_v61 = vpack.c.bf16 %v602_v58, %v596_v57  ;;  %v614_v63 = vld [vmem:[#allocation8 + $0x110] sm:$0xff] }
 0x134   : > { %1970 = vmatpush1.bf16.msra.mxu1 %v1969_v11  ;;  %1940 = vmatprep.subr.bf16.mxu0 %v1939_v15  ;;  %v1987_v62 = vpack.c.bf16 %v615_v60, %v609_v59  ;;  %v621_v1 = vld [vmem:[#allocation8 + $0x148] sm:$0xff]  ;;  %v627_v2 = vld [vmem:[#allocation8 + $0x178] sm:$0xff]  ;;  %v620_v5 = vld [vmem:[#allocation8 + $0x140] sm:$0xff] }
 0x135   : > { %1972 = vmatprep.subr.bf16.mxu1 %v1971_v20  ;;  %v1991_v4 = vpack.c.bf16 %v627_v2, %v621_v1  ;;  %v626_v6 = vld [vmem:[#allocation8 + $0x170] sm:$0xff]  ;;  %v633_v7 = vld [vmem:[#allocation8 + $0x1a8] sm:$0xff]  ;;  %v639_v8 = vld [vmem:[#allocation8 + $0x1d8] sm:$0xff] }
 0x136   : > { %v1993_v10 = vpack.c.bf16 %v626_v6, %v620_v5  ;;  %v1995_v11 = vpack.c.bf16 %v639_v8, %v633_v7  ;;  %v632_v12 = vld [vmem:[#allocation8 + $0x1a0] sm:$0xff]  ;;  %v638_v13 = vld [vmem:[#allocation8 + $0x1d0] sm:$0xff]  ;;  %v645_v14 = vld [vmem:[#allocation8 + $0x208] sm:$0xff] }
 0x137   : > { %1942 = vmatpush1.bf16.msra.mxu0 %v1941_v19  ;;  %v651_v15 = vld [vmem:[#allocation8 + $0x238] sm:$0xff]  ;;  %v1997_v16 = vpack.c.bf16 %v638_v13, %v632_v12  ;;  %v644_v18 = vld [vmem:[#allocation8 + $0x200] sm:$0xff]  ;;  %v650_v19 = vld [vmem:[#allocation8 + $0x230] sm:$0xff] }
 0x138   : > { %1944 = vmatprep.subr.bf16.mxu0 %v1943_v28  ;;  %1974 = vmatpush1.bf16.msra.mxu1 %v1973_v24  ;;  %v1999_v17 = vpack.c.bf16 %v651_v15, %v645_v14  ;;  %v657_v20 = vld [vmem:[#allocation8 + $0x268] sm:$0xff]  ;;  %v663_v21 = vld [vmem:[#allocation8 + $0x298] sm:$0xff]  ;;  %v2001_v22 = vpack.c.bf16 %v650_v19, %v644_v18  ;;  %v656_v24 = vld [vmem:[#allocation8 + $0x260] sm:$0xff] }
 0x139   : > { %1976 = vmatprep.subr.bf16.mxu1 %v1975_v33  ;;  %v2003_v23 = vpack.c.bf16 %v663_v21, %v657_v20  ;;  %v662_v25 = vld [vmem:[#allocation8 + $0x290] sm:$0xff]  ;;  %v669_v26 = vld [vmem:[#allocation8 + $0x2c8] sm:$0xff]  ;;  %v675_v27 = vld [vmem:[#allocation8 + $0x2f8] sm:$0xff] }
 0x13a   : > { %v2005_v28 = vpack.c.bf16 %v662_v25, %v656_v24  ;;  %v2007_v29 = vpack.c.bf16 %v675_v27, %v669_v26  ;;  %v668_v30 = vld [vmem:[#allocation8 + $0x2c0] sm:$0xff]  ;;  %v674_v31 = vld [vmem:[#allocation8 + $0x2f0] sm:$0xff]  ;;  %v890_v7 = vld [vmem:[#allocation9 + $0x8] sm:$0xff] }
 0x13b   : > { %1946 = vmatpush1.bf16.msra.mxu0 %v1945_v32  ;;  %v2009_v32 = vpack.c.bf16 %v674_v31, %v668_v30  ;;  %v914_v57 = vld [vmem:[#allocation11 + $0x10] sm:$0xff]  ;;  %v889_v6 = vld [vmem:[#allocation9] sm:$0xff]  ;;  %v938_v15 = vld [vmem:[#allocation12 + $0x8] sm:$0xff] }
 0x13c   : > { %1980 = vmatprep.subr.bf16.mxu0 %v1979_v37  ;;  %1978 = vmatpush1.bf16.msra.mxu1 %v1977_v38  ;;  %v937_v14 = vld [vmem:[#allocation12] sm:$0xff] }
 0x13d   : > { %1870 = vmatprep.subr.mxu1 %v2606_v9 }
 0x1aa   : > { %v569_v39 = vpop.xlane.xlu0 %568 }
 0x1ab   : > { %v570_v40 = vrot.slane %v569_v39, 4 }
 0x1ad   : > { %v571_v41 = vadd.f32 %v570_v40, %v569_v39  ;;  %v905_v39 = vlaneseq }
 0x1af   : > { %v572_v42 = vrot.slane %v571_v41, 2 }
 0x1b1   : > { %v573_v43 = vadd.f32 %v572_v42, %v571_v41  ;;  %v3020_v41 = vand.u32 127, %v905_v39 }
 0x1b3   : > { %v574_v44 = vrot.slane %v573_v43, 1  ;;  %vm907_vm1 = vcmp.lt.s32.totalorder %v3020_v41, 127  ;;  %vm932_vm2 = vcmp.lt.s32.totalorder %v3020_v41, 1 }
 0x1b5   : > { %v575_v45 = vadd.f32 %v574_v44, %v573_v43  ;;  %v915_v43 = vld [vmem:[#allocation11 + $0x18] sm:$0xff] }
 0x1b7   : > { %v576_v46 = vmul.f32 0.0009765625, %v575_v45 }
 0x1b9   : > { %2237 = vrsqrt.f32 %v576_v46  ;;  %v892_v46 = vld [vmem:[#allocation9 + $0x18] sm:$0xff] }
 0x1c3   : > { %v2238_v49 = vpop.eup %2237 }
 0x1c4   : > { %v578_v53 = vmul.f32 %v2238_v49, %v2998_v0  ;;  %v608_v0 = vld [vmem:[#allocation8 + $0xe0] sm:$0xff]  ;;  %v940_v49 = vld [vmem:[#allocation12 + $0x18] sm:$0xff] }
 0x1c5   : > { %v1989_v3 = vpack.c.bf16 %v614_v63, %v608_v0  ;;  %v912_v0 = vld [vmem:[#allocation11] sm:$0xff]  ;;  %v913_v63 = vld [vmem:[#allocation11 + $0x8] sm:$0xff] }
 0x1c6   : > { %v3009_v55 = vmul.f32 %v578_v53, %v3005_v50 }
 0x1c8   : > { %741 = vmatmul.mubr.f32.vlgmr.msra.gmra.mrb[0].mxu0 %v3009_v55  ;;  %812 = vmatmul.mubr.f32.vlgmr.msra.gmra.mrb[0].mxu1 %v3009_v55 }
 0x1c9   : > { %1982 = vmatpush1.bf16.msra.mxu0 %v1981_v54  ;;  %882 = vmatprep.mubr.f32.mxu0 %v2606_v9 }
 0x1ca   : > { %1984 = vmatprep.subr.bf16.mxu0 %v1983_v56  ;;  %1872 = vmatprep.mubr.msk.f32.mxu1 %vm2609_vm0, %v2606_v9 }
 0x1cd   : > { %1986 = vmatpush1.bf16.msra.mxu0 %v1985_v61  ;;  %v891_v61 = vld [vmem:[#allocation9 + $0x10] sm:$0xff] }
 0x1ce   : > { %1988 = vmatprep.subr.bf16.mxu0 %v1987_v62 }
 0x1d1   : > { %1990 = vmatpush1.bf16.msra.mxu0 %v1989_v3  ;;  %v939_v3 = vld [vmem:[#allocation12 + $0x10] sm:$0xff] }
 0x1d2   : > { %1992 = vmatprep.subr.bf16.mxu0 %v1991_v4 }
 0x1d5   : > { %1994 = vmatpush1.bf16.msra.mxu0 %v1993_v10 }
 0x1d6   : > { %1996 = vmatprep.subr.bf16.mxu0 %v1995_v11 }
 0x1d9   : > { %1998 = vmatpush1.bf16.msra.mxu0 %v1997_v16 }
 0x1da   : > { %2000 = vmatprep.subr.bf16.mxu0 %v1999_v17 }
 0x1dd   : > { %2002 = vmatpush1.bf16.msra.mxu0 %v2001_v22 }
 0x1de   : > { %2004 = vmatprep.subr.bf16.mxu0 %v2003_v23 }
 0x1e1   : > { %2006 = vmatpush1.bf16.msra.mxu0 %v2005_v28  ;;  %v3046_v28 = vshrl.u32 %v905_v39, 7 }
 0x1e2   : > { %2008 = vmatprep.subr.bf16.mxu0 %v2007_v29 }
 0x1e3   : > { %vm951_vm3 = vcmp.ge.s32.totalorder %v3046_v28, %v3020_v41 }
 0x1e5   : > { %2010 = vmatpush1.bf16.msra.mxu0 %v2009_v32 }
 0x1e6   : > { %1860 = vmatprep.subr.mxu0 %v2606_v9 }
 0x1e8   : > { %883 = vmatmul.mubr.f32.vlgmr.msra.gmra.mrb[2].mxu0 %v3009_v55 }
 0x1e9   : > { %1862 = vmatprep.mubr.msk.f32.mxu0 %vm2609_vm0, %v2606_v9 }
 0x29b   : > { %v742_v33 = vpop.f32.mrb[0].mxu0  ;;  %v813_v34 = vpop.f32.mrb[0].mxu1 }
 0x29c   : > { %901 = vrot.lane.b32.xlu1 %v813_v34, %s2607_s16  ;;  %v815_v35 = vpop.f32.mrb[1].mxu1  ;;  %897 = vrot.lane.b32.xlu0 %v742_v33, %s2607_s16  ;;  %v744_v36 = vpop.f32.mrb[1].mxu0  ;;  %v895_v4 = vmul.f32 %v891_v61, %v813_v34  ;;  %v893_v16 = vmul.f32 %v889_v6, %v742_v33  ;;  %v1267_v6 = vld [vmem:[#allocation14 + $0x20] sm:$0xff] }
 0x29d   : > { %v896_v51 = vmul.f32 %v892_v46, %v815_v35  ;;  %v894_v17 = vmul.f32 %v890_v7, %v744_v36  ;;  %v1268_v7 = vld [vmem:[#allocation14 + $0x28] sm:$0xff] }
 0x2a0   : > { %928 = vrot.lane.b32.xlu1 %v813_v34, %s2608_s3 }
 0x2a4   : > { %903 = vrot.lane.b32.xlu1 %v815_v35, %s2607_s16 }
 0x2a8   : > { %930 = vrot.lane.b32.xlu1 %v815_v35, %s2608_s3 }
 0x2ac   : > { %899 = vrot.lane.b32.xlu1 %v744_v36, %s2607_s16 }
 0x2b0   : > { %926 = vrot.lane.b32.xlu1 %v744_v36, %s2608_s3 }
 0x2b4   : > { %924 = vrot.lane.b32.xlu1 %v742_v33, %s2608_s3 }
 0x2bb   : > { %v884_v37 = vpop.f32.mrb[2].mxu0 }
 0x2bc   : > { %v886_v38 = vpop.f32.mrb[3].mxu0 }
 0x30e   : > { %v902_v40 = vpop.permute.xlu1 %901  ;;  %v898_v44 = vpop.permute.xlu0 %897 }
 0x312   : > { %v929_v42 = vpop.permute.xlu1 %928 }
 0x316   : > { %v904_v45 = vpop.permute.xlu1 %903 }
 0x317   : > { %v911_v47 = vsel %vm907_vm1, %v904_v45, %v898_v44  ;;  %v908_v58 = vsel %vm907_vm1, %v902_v40, %v904_v45 }
 0x318   : > { %v919_v48 = vmul.f32 %v915_v43, %v911_v47  ;;  %v918_v62 = vmul.f32 %v914_v57, %v908_v58  ;;  %v1279_v47 = vld [vmem:[#allocation14 + $0x80] sm:$0xff]  ;;  %v1282_v57 = vld [vmem:[#allocation14 + $0x98] sm:$0xff] }
 0x31a   : > { %v931_v52 = vpop.permute.xlu1 %930  ;;  %v923_v54 = vadd.f32 %v919_v48, %v896_v51  ;;  %v922_v10 = vadd.f32 %v918_v62, %v895_v4  ;;  %v1280_v48 = vld [vmem:[#allocation14 + $0x88] sm:$0xff]  ;;  %v1265_v62 = vld [vmem:[#allocation14 + $0x10] sm:$0xff] }
 0x31b   : > { %v933_v53 = vsel %vm932_vm2, %v929_v42, %v931_v52 }
 0x31c   : > { %v944_v56 = vmul.f32 %v940_v49, %v933_v53  ;;  %v2011_v49 = vpack.c.bf16 %v1280_v48, %v1279_v47  ;;  %v1263_v53 = vld [vmem:[#allocation14] sm:$0xff]  ;;  %v2610_v47 = vmov 0.0|0.0  }
 0x31e   : > { %v948_v59 = vadd.f32 %v944_v56, %v923_v54  ;;  %v900_v60 = vpop.permute.xlu1 %899  ;;  %v1264_v54 = vld [vmem:[#allocation14 + $0x8] sm:$0xff]  ;;  %v1281_v56 = vld [vmem:[#allocation14 + $0x90] sm:$0xff] }
 0x31f   : > { %v909_v1 = vsel %vm907_vm1, %v900_v60, %v902_v40  ;;  %v910_v2 = vsel %vm907_vm1, %v898_v44, %v900_v60  ;;  %v2015_v61 = vpack.c.bf16 %v1282_v57, %v1281_v56  ;;  %v1388_v57 = vld [vmem:[#allocation15 + $0x10] sm:$0xff] }
 0x320   : > { %1871 = vmatpush3.xpose.msra.mxu1 %v948_v59  ;;  %v916_v11 = vmul.f32 %v912_v0, %v910_v2  ;;  %v917_v12 = vmul.f32 %v913_v63, %v909_v1  ;;  %v2013_v59 = vpack.c.bf16 %v1264_v54, %v1263_v53  ;;  %v1266_v0 = vld [vmem:[#allocation14 + $0x18] sm:$0xff]  ;;  %v1283_v63 = vld [vmem:[#allocation14 + $0xa0] sm:$0xff]  ;;  %v1284_v1 = vld [vmem:[#allocation14 + $0xa8] sm:$0xff] }
 0x321   : > { %1875 = vmatprep.subr.mxu1 %v2606_v9 }
 0x322   : > { %v927_v5 = vpop.permute.xlu1 %926  ;;  %v920_v22 = vadd.f32 %v916_v11, %v893_v16  ;;  %v921_v23 = vadd.f32 %v917_v12, %v894_v17  ;;  %v2021_v11 = vpack.c.bf16 %v1268_v7, %v1267_v6  ;;  %v1288_v16 = vld [vmem:[#allocation14 + $0xc8] sm:$0xff]  ;;  %v1398_v7 = vld [vmem:[#allocation15 + $0x60] sm:$0xff] }
 0x323   : > { %v934_v8 = vsel %vm932_vm2, %v927_v5, %v929_v42 }
 0x324   : > { %v943_v13 = vmul.f32 %v939_v3, %v934_v8  ;;  %v2017_v3 = vpack.c.bf16 %v1266_v0, %v1265_v62  ;;  %v1285_v8 = vld [vmem:[#allocation14 + $0xb0] sm:$0xff] }
 0x325   : > { %v1392_v0 = vld [vmem:[#allocation15 + $0x30] sm:$0xff] }
 0x326   : > { %v947_v18 = vadd.f32 %v943_v13, %v922_v10  ;;  %v925_v19 = vpop.permute.xlu1 %924  ;;  %v1286_v10 = vld [vmem:[#allocation14 + $0xb8] sm:$0xff]  ;;  %v1269_v13 = vld [vmem:[#allocation14 + $0x30] sm:$0xff] }
 0x327   : > { %v935_v20 = vsel %vm932_vm2, %v925_v19, %v927_v5  ;;  %v936_v21 = vsel %vm932_vm2, %v931_v52, %v925_v19  ;;  %v2019_v5 = vpack.c.bf16 %v1284_v1, %v1283_v63  ;;  %v2023_v12 = vpack.c.bf16 %v1286_v10, %v1285_v8  ;;  %v1271_v19 = vld [vmem:[#allocation14 + $0x40] sm:$0xff]  ;;  %v1393_v63 = vld [vmem:[#allocation15 + $0x38] sm:$0xff]  ;;  %v1399_v8 = vld [vmem:[#allocation15 + $0x68] sm:$0xff] }
 0x328   : > { %v941_v24 = vmul.f32 %v937_v14, %v936_v21  ;;  %v942_v25 = vmul.f32 %v938_v15, %v935_v20  ;;  %1861 = vmatpush3.xpose.msra.mxu0 %v947_v18  ;;  %v1270_v14 = vld [vmem:[#allocation14 + $0x38] sm:$0xff]  ;;  %v1287_v15 = vld [vmem:[#allocation14 + $0xc0] sm:$0xff]  ;;  %v1272_v20 = vld [vmem:[#allocation14 + $0x48] sm:$0xff]  ;;  %v2053_v1 = vpack.c.bf16 %v1393_v63, %v1392_v0  ;;  %v2062_v10 = vpack.c.bf16 %v1399_v8, %v1398_v7 }
 0x329   : > { %1865 = vmatprep.subr.mxu0 %v2606_v9  ;;  %v2025_v17 = vpack.c.bf16 %v1270_v14, %v1269_v13  ;;  %v2027_v18 = vpack.c.bf16 %v1288_v16, %v1287_v15  ;;  %v1289_v21 = vld [vmem:[#allocation14 + $0xd0] sm:$0xff]  ;;  %v1480_v14 = vld [vmem:[#allocation17 + $0x8] sm:$0xff]  ;;  %v1482_v15 = vld [vmem:[#allocation17 + $0x18] sm:$0xff] }
 0x32a   : > { %v945_v26 = vadd.f32 %v941_v24, %v920_v22  ;;  %v946_v27 = vadd.f32 %v942_v25, %v921_v23  ;;  %v1290_v22 = vld [vmem:[#allocation14 + $0xd8] sm:$0xff]  ;;  %v2029_v23 = vpack.c.bf16 %v1272_v20, %v1271_v19  ;;  %v1273_v25 = vld [vmem:[#allocation14 + $0x50] sm:$0xff]  ;;  %v1479_v16 = vld [vmem:[#allocation17] sm:$0xff] }
 0x32b   : > { %v2031_v24 = vpack.c.bf16 %v1290_v22, %v1289_v21  ;;  %v1484_v19 = vld [vmem:[#allocation17 + $0x28] sm:$0xff]  ;;  %v1486_v20 = vld [vmem:[#allocation17 + $0x38] sm:$0xff]  ;;  %v1507_v8 = vld [vmem:[#allocation17 + $0xe0] sm:$0xff] }
 0x32c   : > { %1863 = vmatmul.mubr.f32.vlgmr.msra.gmra.mrb[4].mxu0 %v945_v26  ;;  %1873 = vmatmul.mubr.f32.vlgmr.msra.gmra.mrb[2].mxu1 %v946_v27  ;;  %v1274_v26 = vld [vmem:[#allocation14 + $0x58] sm:$0xff]  ;;  %v1291_v27 = vld [vmem:[#allocation14 + $0xe0] sm:$0xff]  ;;  %v2071_v22 = vpack.c.bf16 %v1486_v20, %v1484_v19 }
 0x32d   : > { %1866 = vmatpush3.msra.mxu0 %v884_v37  ;;  %1876 = vmatpush3.msra.mxu1 %v886_v38 }
 0x32e   : > { %1877 = vmatprep.mubr.msk.f32.mxu1 %vm2609_vm0, %v2606_v9  ;;  %1867 = vmatprep.mubr.msk.f32.mxu0 %vm2609_vm0, %v2606_v9 }
 0x32f   : > { %2012 = vmatprep.subr.bf16.mxu1 %v2011_v49  ;;  %2043 = vmatprep.subr.bf16.mxu0 %v2610_v47 }
 0x3ff   : > { %v1018_v29 = vpop.f32.mrb[4].mxu0  ;;  %v1174_v30 = vpop.f32.mrb[2].mxu1 }
 0x400   : > { %v1022_v31 = vsel %vm951_vm3, %v1018_v29, -1e+30  ;;  %v1178_v32 = vsel %vm951_vm3, %v1174_v30, -1e+30  ;;  %v1864_v33 = vpop.f32.mrb[5].mxu0  ;;  %v1874_v34 = vpop.f32.mrb[3].mxu1  ;;  %v2033_v30 = vpack.c.bf16 %v1274_v26, %v1273_v25 }
 0x401   : > { %v1179_v35 = vsel %vm1023_vm4, %v1178_v32, -inf  ;;  %v1024_v36 = vsel %vm1023_vm4, %v1022_v31, -inf  ;;  %v1292_v29 = vld [vmem:[#allocation14 + $0xe8] sm:$0xff]  ;;  %v1490_v26 = vld [vmem:[#allocation17 + $0x58] sm:$0xff] }
 0x402   : > { %1180 = vmax.xlane.f32.xlu0 %v1179_v35  ;;  %1025 = vmax.xlane.f32.xlu1 %v1024_v36  ;;  %v1276_v33 = vld [vmem:[#allocation14 + $0x68] sm:$0xff]  ;;  %v1293_v35 = vld [vmem:[#allocation14 + $0xf0] sm:$0xff]  ;;  %v1294_v36 = vld [vmem:[#allocation14 + $0xf8] sm:$0xff] }
 0x403   : > { %v1488_v25 = vld [vmem:[#allocation17 + $0x48] sm:$0xff] }
 0x48f   : > { %v1181_v37 = vpop.xlane.xlu0 %1180  ;;  %v1026_v38 = vpop.xlane.xlu1 %1025 }
 0x490   : > { %v1182_v39 = vsub.f32 %v1178_v32, %v1181_v37  ;;  %v1027_v40 = vsub.f32 %v1022_v31, %v1026_v38  ;;  %v2035_v31 = vpack.c.bf16 %v1292_v29, %v1291_v27  ;;  %v1275_v32 = vld [vmem:[#allocation14 + $0x60] sm:$0xff]  ;;  %v2039_v37 = vpack.c.bf16 %v1294_v36, %v1293_v35  ;;  %v1277_v38 = vld [vmem:[#allocation14 + $0x70] sm:$0xff] }
 0x491   : > { %v2037_v34 = vpack.c.bf16 %v1276_v33, %v1275_v32  ;;  %v2075_v29 = vpack.c.bf16 %v1490_v26, %v1488_v25  ;;  %v1492_v32 = vld [vmem:[#allocation17 + $0x68] sm:$0xff]  ;;  %v1494_v33 = vld [vmem:[#allocation17 + $0x78] sm:$0xff]  ;;  %v1491_v36 = vld [vmem:[#allocation17 + $0x60] sm:$0xff]  ;;  %v1519_v25 = vsub.s32 1, %v3046_v28 }
 0x492   : > { %v1183_v42 = vmul.f32 1.442695, %v1182_v39  ;;  %v1028_v43 = vmul.f32 1.442695, %v1027_v40  ;;  %v1278_v39 = vld [vmem:[#allocation14 + $0x78] sm:$0xff]  ;;  %v2079_v35 = vpack.c.bf16 %v1494_v33, %v1492_v32 }
 0x493   : > { %v2041_v40 = vpack.c.bf16 %v1278_v39, %v1277_v38  ;;  %v1496_v38 = vld [vmem:[#allocation17 + $0x88] sm:$0xff]  ;;  %v1498_v39 = vld [vmem:[#allocation17 + $0x98] sm:$0xff] }
 0x494   : > { %2239 = vpow2.f32 %v1183_v42 }
 0x495   : > { %2241 = vpow2.f32 %v1028_v43 }
 0x49e   : > { %v2240_v41 = vpop.eup %2239 }
 0x49f   : > { %v1185_v44 = vsel %vm1023_vm4, %v2240_v41, 0.0  ;;  %v2242_v45 = vpop.eup %2241 }
 0x4a0   : > { %1186 = vadd.xlane.f32.xlu0 %v1185_v44  ;;  %v1030_v46 = vsel %vm1023_vm4, %v2242_v45, 0.0 }
 0x4a4   : > { %1031 = vadd.xlane.f32.xlu0 %v1030_v46  ;;  %v1387_v46 = vld [vmem:[#allocation15 + $0x8] sm:$0xff] }
 0x52d   : > { %v1187_v51 = vpop.xlane.xlu0 %1186 }
 0x52e   : > { %2243 = vrcp.f32 %v1187_v51  ;;  %v1793_v51 = vld [vmem:[%s3134_s7] ss:$0 sm:$0xff] }
 0x531   : > { %v1032_v52 = vpop.xlane.xlu0 %1031 }
 0x532   : > { %2245 = vrcp.f32 %v1032_v52 }
 0x538   : > { %v2244_v58 = vpop.eup %2243 }
 0x539   : > { %v1189_v60 = vmul.f32 %v2244_v58, %v2240_v41  ;;  %v1389_v58 = vld [vmem:[#allocation15 + $0x18] sm:$0xff] }
 0x53b   : > { %1878 = vmatmul.mubr.msk.f32.vlgmr.msra.gmra.mrb[4].mxu1 %vm1023_vm4, %v1189_v60  ;;  %v1390_v60 = vld [vmem:[#allocation15 + $0x20] sm:$0xff] }
 0x53c   : > { %v2246_v2 = vpop.eup %2245  ;;  %2014 = vmatpush3.bf16.msra.mxu1 %v2013_v59  ;;  %v2047_v59 = vpack.c.bf16 %v1389_v58, %v1388_v57  ;;  %v1505_v57 = vld [vmem:[#allocation17 + $0xd0] sm:$0xff]  ;;  %v1508_v58 = vld [vmem:[#allocation17 + $0xe8] sm:$0xff] }
 0x53d   : > { %v1034_v4 = vmul.f32 %v2246_v2, %v2242_v45  ;;  %2016 = vmatprep.subr.bf16.mxu1 %v2015_v61  ;;  %v1386_v45 = vld [vmem:[#allocation15] sm:$0xff]  ;;  %v1391_v61 = vld [vmem:[#allocation15 + $0x28] sm:$0xff] }
 0x53e   : > { %v2044_v48 = vpack.c.bf16 %v1387_v46, %v1386_v45  ;;  %v2050_v62 = vpack.c.bf16 %v1391_v61, %v1390_v60  ;;  %v1395_v2 = vld [vmem:[#allocation15 + $0x48] sm:$0xff]  ;;  %v1502_v45 = vld [vmem:[#allocation17 + $0xb8] sm:$0xff] }
 0x53f   : > { %1868 = vmatmul.mubr.msk.f32.vlgmr.msra.gmra.mrb[6].mxu0 %vm1023_vm4, %v1034_v4  ;;  %v1396_v4 = vld [vmem:[#allocation15 + $0x50] sm:$0xff] }
 0x540   : > { %2018 = vmatpush3.bf16.msra.mxu1 %v2017_v3  ;;  %1912 = vmatprep.mubr.msk.f32.mxu0 %vm2609_vm0, %v2606_v9 }
 0x541   : > { %2020 = vmatprep.subr.bf16.mxu1 %v2019_v5  ;;  %2045 = vmatpush3.bf16.msra.mxu0 %v2044_v48  ;;  %v1397_v5 = vld [vmem:[#allocation15 + $0x58] sm:$0xff]  ;;  %v1499_v48 = vld [vmem:[#allocation17 + $0xa0] sm:$0xff] }
 0x542   : > { %2046 = vmatprep.subr.bf16.mxu0 %v2610_v47  ;;  %v2059_v6 = vpack.c.bf16 %v1397_v5, %v1396_v4 }
 0x544   : > { %2022 = vmatpush3.bf16.msra.mxu1 %v2021_v11  ;;  %v1400_v11 = vld [vmem:[#allocation15 + $0x70] sm:$0xff] }
 0x545   : > { %2024 = vmatprep.subr.bf16.mxu1 %v2023_v12  ;;  %2048 = vmatpush3.bf16.msra.mxu0 %v2047_v59  ;;  %v1401_v12 = vld [vmem:[#allocation15 + $0x78] sm:$0xff] }
 0x546   : > { %2049 = vmatprep.subr.bf16.mxu0 %v2610_v47  ;;  %v2065_v13 = vpack.c.bf16 %v1401_v12, %v1400_v11  ;;  %v1510_v59 = vld [vmem:[#allocation17 + $0xf8] sm:$0xff]  ;;  %v1794_v12 = vld [vmem:[%s3136_s9] ss:$0 sm:$0xff] }
 0x547   : > { %v2095_v61 = vpack.c.bf16 %v1510_v59, %v1508_v58 }
 0x548   : > { %2026 = vmatpush3.bf16.msra.mxu1 %v2025_v17  ;;  %v2067_v17 = vpack.c.bf16 %v1482_v15, %v1480_v14 }
 0x549   : > { %2028 = vmatprep.subr.bf16.mxu1 %v2027_v18  ;;  %2051 = vmatpush3.bf16.msra.mxu0 %v2050_v62  ;;  %v1481_v18 = vld [vmem:[#allocation17 + $0x10] sm:$0xff] }
 0x54a   : > { %2052 = vmatprep.subr.bf16.mxu0 %v2610_v47  ;;  %v2069_v21 = vpack.c.bf16 %v1481_v18, %v1479_v16  ;;  %v1515_v16 = vsub.s32 0, %v3046_v28  ;;  %v1595_v18 = vstv %s1594_s26  ;;  %s2513_s26 = scalar_lea.vmem %s2512_s23, 256 }
 0x54b   : > { %p2515_p9 = scmp.lt.s32.totalorder %s2513_s26, %s2507_s18 }
 0x54c   : > { %2030 = vmatpush3.bf16.msra.mxu1 %v2029_v23  ;;  %v1483_v23 = vld [vmem:[#allocation17 + $0x20] sm:$0xff] }
 0x54d   : > { %2032 = vmatprep.subr.bf16.mxu1 %v2031_v24  ;;  %2054 = vmatpush3.bf16.msra.mxu0 %v2053_v1  ;;  %v1485_v24 = vld [vmem:[#allocation17 + $0x30] sm:$0xff]  ;;  %p2516_p13 = por %p2515_p9, %p2514_p3 }
 0x54e   : > { %2055 = vmatprep.subr.bf16.mxu0 %v2610_v47  ;;  %v2073_v27 = vpack.c.bf16 %v1485_v24, %v1483_v23 }
 0x54f   : > { %p2517_p0 = pnand %p2516_p13, %p2510_p1 }
 0x550   : > { %2034 = vmatpush3.bf16.msra.mxu1 %v2033_v30  ;;  %v1487_v30 = vld [vmem:[#allocation17 + $0x40] sm:$0xff] }
 0x551   : > { %2036 = vmatprep.subr.bf16.mxu1 %v2035_v31  ;;  %v1489_v31 = vld [vmem:[#allocation17 + $0x50] sm:$0xff] }
 0x554   : > { %2038 = vmatpush3.bf16.msra.mxu1 %v2037_v34  ;;  %v2077_v34 = vpack.c.bf16 %v1489_v31, %v1487_v30 }
 0x555   : > { %2040 = vmatprep.subr.bf16.mxu1 %v2039_v37  ;;  %v1493_v37 = vld [vmem:[#allocation17 + $0x70] sm:$0xff] }
 0x558   : > { %2042 = vmatpush3.bf16.msra.mxu1 %v2041_v40  ;;  %v2081_v40 = vpack.c.bf16 %v1493_v37, %v1491_v36 }
 0x559   : > { %2068 = vmatprep.subr.bf16.mxu1 %v2067_v17 }
 0x60e   : > { %v1259_v42 = vpop.f32.mrb[4].mxu1 }
 0x60f   : > { %v1879_v43 = vpop.f32.mrb[5].mxu1  ;;  %1366 = vmatprep.mubr.f32.mxu1 %v1259_v42  ;;  %v2083_v42 = vpack.c.bf16 %v1498_v39, %v1496_v38 }
 0x610   : > { %v1495_v43 = vld [vmem:[#allocation17 + $0x80] sm:$0xff] }
 0x612   : > { %v1104_v41 = vpop.f32.mrb[6].mxu0 }
 0x613   : > { %v1869_v44 = vpop.f32.mrb[7].mxu0  ;;  %1367 = vmatmul.mubr.f32.vlgmr.msra.gmra.mrb[6].mxu1 %v1104_v41  ;;  %v1497_v41 = vld [vmem:[#allocation17 + $0x90] sm:$0xff] }
 0x614   : > { %1587 = vmatprep.mubr.f32.mxu1 %v2606_v9  ;;  %2070 = vmatpush1.bf16.msra.mxu1 %v2069_v21  ;;  %v1500_v44 = vld [vmem:[#allocation17 + $0xa8] sm:$0xff]  ;;  %v2085_v46 = vpack.c.bf16 %v1497_v41, %v1495_v43 }
 0x615   : > { %2072 = vmatprep.subr.bf16.mxu1 %v2071_v22 }
 0x618   : > { %2074 = vmatpush1.bf16.msra.mxu1 %v2073_v27 }
 0x619   : > { %2076 = vmatprep.subr.bf16.mxu1 %v2075_v29 }
 0x61c   : > { %2078 = vmatpush1.bf16.msra.mxu1 %v2077_v34 }
 0x61d   : > { %2080 = vmatprep.subr.bf16.mxu1 %v2079_v35 }
 0x620   : > { %2082 = vmatpush1.bf16.msra.mxu1 %v2081_v40 }
 0x621   : > { %2084 = vmatprep.subr.bf16.mxu1 %v2083_v42 }
 0x624   : > { %2086 = vmatpush1.bf16.msra.mxu1 %v2085_v46 }
 0x6e6   : > { %v1840_v49 = vpop.f32.mrb[6].mxu1 }
 0x6e7   : > { %v1841_v52 = vpop.f32.mrb[7].mxu1 }
 0x6e8   : > { %v1842_v53 = vadd.f32 %v1841_v52, %v1840_v49  ;;  %v1501_v49 = vld [vmem:[#allocation17 + $0xb0] sm:$0xff]  ;;  %v1506_v52 = vld [vmem:[#allocation17 + $0xd8] sm:$0xff] }
 0x6ea   : > { %v1369_v54 = vadd.f32 %v1842_v53, %v1793_v51  ;;  %v1504_v51 = vld [vmem:[#allocation17 + $0xc8] sm:$0xff]  ;;  %v2089_v53 = vpack.c.bf16 %v1501_v49, %v1499_v48 }
 0x6ec   : > { %v3063_v56 = vadd.f32 %v1369_v54, %v3009_v55  ;;  %v1394_v55 = vld [vmem:[#allocation15 + $0x40] sm:$0xff]  ;;  %v2091_v54 = vpack.c.bf16 %v1506_v52, %v1504_v51 }
 0x6ed   : > { %v2056_v3 = vpack.c.bf16 %v1395_v2, %v1394_v55 }
 0x6ee   : > { %v1373_v9 = vmul.f32 %v3063_v56, %v3063_v56 }
 0x6ef   : > { %2057 = vmatpush3.bf16.msra.mxu0 %v2056_v3 }
 0x6f0   : > { %1374 = vadd.xlane.f32.xlu1 %v1373_v9  ;;  %2058 = vmatprep.subr.bf16.mxu0 %v2610_v47  ;;  %v1503_v9 = vld [vmem:[#allocation17 + $0xc0] sm:$0xff] }
 0x6f1   : > { %v2093_v60 = vpack.c.bf16 %v1505_v57, %v1503_v9 }
 0x6f3   : > { %2060 = vmatpush3.bf16.msra.mxu0 %v2059_v6 }
 0x6f4   : > { %2061 = vmatprep.subr.bf16.mxu0 %v2610_v47 }
 0x6f7   : > { %2063 = vmatpush3.bf16.msra.mxu0 %v2062_v10  ;;  %v1509_v10 = vld [vmem:[#allocation17 + $0xf0] sm:$0xff] }
 0x6f8   : > { %2064 = vmatprep.subr.bf16.mxu0 %v2610_v47  ;;  %v2087_v47 = vpack.c.bf16 %v1502_v45, %v1500_v44  ;;  %v2097_v11 = vpack.c.bf16 %v1509_v10, %v1507_v8 }
 0x6fa   : > { %2088 = vmatprep.subr.bf16.mxu1 %v2087_v47 }
 0x6fb   : > { %2066 = vmatpush3.bf16.msra.mxu0 %v2065_v13  ;;  %2090 = vmatpush1.bf16.msra.mxu1 %v2089_v53 }
 0x6fc   : > { %2092 = vmatprep.subr.bf16.mxu1 %v2091_v54 }
 0x6ff   : > { %2094 = vmatpush1.bf16.msra.mxu1 %v2093_v60 }
 0x700   : > { %2096 = vmatprep.subr.bf16.mxu1 %v2095_v61 }
 0x703   : > { %2098 = vmatpush1.bf16.msra.mxu1 %v2097_v11 }
 0x77d   : > { %v1375_v62 = vpop.xlane.xlu1 %1374 }
 0x77e   : > { %v1376_v0 = vrot.slane %v1375_v62, 4 }
 0x780   : > { %v1377_v63 = vadd.f32 %v1376_v0, %v1375_v62 }
 0x782   : > { %v1378_v1 = vrot.slane %v1377_v63, 2 }
 0x784   : > { %v1379_v55 = vadd.f32 %v1378_v1, %v1377_v63 }
 0x786   : > { %v1380_v2 = vrot.slane %v1379_v55, 1 }
 0x788   : > { %v1381_v3 = vadd.f32 %v1380_v2, %v1379_v55 }
 0x78a   : > { %v1382_v4 = vmul.f32 0.0009765625, %v1381_v3 }
 0x78c   : > { %2247 = vrsqrt.f32 %v1382_v4 }
 0x796   : > { %v2248_v5 = vpop.eup %2247 }
 0x797   : > { %v1384_v6 = vmul.f32 %v2248_v5, %v3063_v56 }
 0x799   : > { %v1385_v7 = vmul.f32 %v1384_v6, %v3005_v50  ;;  %v1511_v50 = vld [vmem:[%s3177_s12] sm:$0x3] }
 0x79a   : > { %v1516_v56 = vrot.slane %v1511_v50, %v1515_v16  ;;  %v1520_v26 = vrot.slane %v1511_v50, %v1519_v25 }
 0x79b   : > { %1913 = vmatmul.mubr.f32.vlgmr.msra.gmra.mrb[8].mxu0 %v1385_v7 }
 0x86e   : > { %v1475_v13 = vpop.f32.mrb[8].mxu0 }
 0x86f   : > { %v1476_v14 = vadd.f32 %v1794_v12, %v1475_v13  ;;  %v1914_v15 = vpop.f32.mrb[9].mxu0 }
 0x871   : > { %1588 = vmatmul.mubr.f32.vlgmr.msra.gmra.mrb[8].mxu1 %v1476_v14 }
 0x944   : > { %v1589_v17 = vpop.f32.mrb[8].mxu1 }
 0x945   : > { %v1590_v19 = vadd.f32 %v1589_v17, %v1516_v56  ;;  %v1591_v20 = vpop.f32.mrb[9].mxu1 }
 0x946   : > { %v1592_v30 = vadd.f32 %v1591_v20, %v1520_v26 }
 0x947   : > { %v1596_v21 = vmul.f32 %v1595_v18, %v1590_v19 }
 0x949   : > { %v1795_v22 = vmul.f32 -1.442695, %v1596_v21 }
 0x94b   : > { %2249 = vpow2.f32 %v1795_v22 }
 0x955   : > { %v2250_v23 = vpop.eup %2249 }
 0x956   : > { %v1600_v24 = vadd.f32 1.0, %v2250_v23 }
 0x958   : > { %2251 = vrcp.f32 %v1600_v24 }
 0x962   : > { %v2252_v27 = vpop.eup %2251 }
 0x963   : > { %v1603_v29 = vmul.f32 %v2252_v27, %v1590_v19 }
 0x965   : > { %v1604_v31 = vmul.f32 %v1603_v29, %v1592_v30 }
 0x967   : > { %v1605_v32 = vadd.f32 %v1604_v31, %v1385_v7 }
 0x969   : > { %1606 = vst [vmem:[%s564_s25] sm:$0xff] %v1605_v32 }
 0x96a   : > { %2520 = shalt.err (!%p2517_p0)
}
 0x96b   : > { %s2521_s1 = scalar_lea.hbm %s3083_s19, 128  ;;  %s2525_s12 = scalar_lea.hbm %s3178_s17, 256 }
 0x96c   : > { %p2522_p2 = scmp.ne.s32.totalorder %s3083_s19, %s2521_s1  ;;  %p2526_p11 = scmp.lt.u32.totalorder %s3083_s19, %s3178_s17 }
 0x96d   : > { %p2527_p6 = scmp.lt.u32.totalorder %s2525_s12, %s2521_s1  ;;  %p2529_p5 = scmp.lt.u32.totalorder %s2521_s1, %s3083_s19 }
 0x96e   : > { %p2523_p8 = pnand %p2522_p2, %p3179_p7 }
 0x96f   : > { %p2528_p12 = por %p2527_p6, %p2526_p11 }
 0x970   : > { %p2524_p10 = pneg %p2523_p8 }
 0x971   : > { %p2530_p4 = por %p2529_p5, %p2528_p12 }
 0x973   : > { %p2531_p1 = pnand %p2530_p4, %p2524_p10 }
 0x975   : > { %2534 = shalt.err (!%p2531_p1)
}
 0x976   : > { %2133 = dma.vmem_to_hbm [thread:$0]  (%p3179_p7), %s3085_s21, 128, %s3083_s19, %s1608_s22  }
 0x977 PF: > { %s1633_s16 = sand.u32 1, %s2577_s27   ;;  %p3180_p3 = scmp.ne.s32.totalorder %s3166_s13, 0 }
 0x978   : > { %p3181_p9 = scmp.ge.s32.totalorder %s2589_s30, 2  ;;  %s1634_s3 = scalar_lea.sflag [#allocation5], %s1633_s16 }
 0x97a   : > { %p2165_p13 = pnand %p3181_p9, %p3180_p3 }
 0x97c   : > { %2572 = dma.done.wait (!%p2165_p13), %s1634_s3, 128  }
 0x97d   : > { %2574 = vsyncadd (!%p2165_p13), %s1634_s3, 4294967168  ;;  %p31_p0 = scmp.ge.s32.totalorder %s2896_s20, 4   ;;  %s3182_s27 = smov %s2581_s28 }
 0x97e   : > { %s3183_s28 = smov %s2585_s29  ;;  %s3184_s29 = smov %s2907_s11 }
 0x97f   : > { %s3185_s30 = smov %s2896_s20  ;;  %33 = sbr.rel (!%p31_p0) target bundleno = 17 (0x11), region = 149 }
 0x986   :  { %1639 = vsyncpa [#allocation4], 1 }
 0x987   :  { %1641 = vsyncpa [#allocation4 + $0x1], 1 }
 0x988   :  { %1642 = vsyncpa [#allocation7], 1 }
 0x989   :  { %1643 = vsyncpa [#allocation10], 1 }
 0x98a   :  { %1644 = vsyncpa [#allocation13], 1 }
 0x98b   :  { %1645 = vsyncpa [#allocation16], 1 }
 0x98c   :  { %1646 = vsyncpa [#allocation5], 1 }
 0x98d   :  { %1648 = vsyncpa [#allocation5 + $0x1], 1 }

</bundles_post_ra>
